<compile_context>
chip_gen: v6e
topology: v6e:2x2x1
jax: 0.10.0
libtpu: 0.0.40
codegen_flags: <defaults>
</compile_context>

<pallas_src>
import math
import functools

import jax
import jax.numpy as jnp
from jax.experimental import pallas as pl
from jax.experimental import pallas as _pl_unused  # noqa: F401 (keep namespace explicit)
from jax.experimental.pallas import tpu as pltpu


def _gcnii_kernel(h_ref, adj_ref, w1_ref, b1_ref, wl_ref, w2_ref, b2_ref,
                  out_ref, *, k, alpha, lamda, mm_dtype):
    f32 = jnp.float32

    # --- linear_1: H0 = h @ W1 + b1  (W1 pre-transposed to [F, H]; inputs in mm_dtype) ---
    H0 = jnp.dot(h_ref[...], w1_ref[...], preferred_element_type=f32) + b1_ref[...]

    adj_b = adj_ref[...]          # already mm_dtype; no scale, no extra VMEM copy
    aH0 = alpha * H0              # loop-invariant initial-residual term (f32)
    one_m_alpha = 1.0 - alpha

    Hk = H0
    for layer_idx in range(k):    # k is small & static -> unrolled
        beta = math.log(lamda / (layer_idx + 1) + 1.0)
        # propagation + initial residual; (1-alpha) folded into the [N,H] f32 accumulator
        support = one_m_alpha * jnp.dot(adj_b, Hk.astype(mm_dtype),
                                        preferred_element_type=f32) + aH0
        # identity-mapping fold:
        #   support @ ((1-beta)*I + beta*W) == (1-beta)*support + beta*(support @ W)
        sw = jnp.dot(support.astype(mm_dtype), wl_ref[layer_idx],
                     preferred_element_type=f32)
        Hk = jnp.maximum((1.0 - beta) * support + beta * sw, 0.0)

    # --- linear_2: logits = Hk @ W2 + b2 ---
    # Padded class columns carry a -1e30 bias (set in the wrapper), so no in-kernel mask.
    logits = jnp.dot(Hk.astype(mm_dtype), w2_ref[...],
                     preferred_element_type=f32) + b2_ref[...]

    # --- log_softmax over the (lane-padded, pre-masked) class axis ---
    m = jnp.max(logits, axis=-1, keepdims=True)
    shifted = logits - m
    lse = jnp.log(jnp.sum(jnp.exp(shifted), axis=-1, keepdims=True))
    out_ref[...] = shifted - lse


def _round_up(x, m):
    return -(-x // m) * m


def _pad_to(x, axis, target, fill=0.0):
    size = x.shape[axis]
    if size == target:
        return x
    widths = [(0, 0)] * x.ndim
    widths[axis] = (0, target - size)
    return jnp.pad(x, widths, constant_values=fill)


def gcnii_forward(h, adj, w1, b1, wl, w2, b2, *, k, alpha, lamda,
                  mm_dtype=jnp.bfloat16):
    n, features = h.shape
    hidden = w1.shape[1]
    classes = w2.shape[1]

    # Lane-dense padding: node axis and all feature/hidden/class axes -> multiples of 128.
    n_p = _round_up(n, 128)
    f_p = _round_up(features, 128)
    hid_p = _round_up(hidden, 128)
    c_p = _round_up(classes, 128)

    # Matmul operands are pre-cast to mm_dtype (halves DMA + VMEM for the [N,N] adj in
    # the bf16 path); biases stay f32 and are added to the f32 accumulators.
    h_p = _pad_to(_pad_to(h, 0, n_p), 1, f_p).astype(mm_dtype)
    adj_p = _pad_to(_pad_to(adj, 0, n_p), 1, n_p).astype(mm_dtype)
    w1_p = _pad_to(_pad_to(w1, 0, f_p), 1, hid_p).astype(mm_dtype)
    b1_p = _pad_to(b1, 1, hid_p).astype(jnp.float32)
    wl_p = _pad_to(_pad_to(wl, 1, hid_p), 2, hid_p).astype(mm_dtype)
    w2_p = _pad_to(_pad_to(w2, 0, hid_p), 1, c_p).astype(mm_dtype)
    # Pre-mask padded class columns: padded logits = Hk @ 0 + (-1e30).
    b2_p = _pad_to(b2, 1, c_p, fill=-1e30).astype(jnp.float32)

    kernel = functools.partial(
        _gcnii_kernel, k=k, alpha=alpha, lamda=lamda, mm_dtype=mm_dtype)

    # VMEM budget from the actual padded buffers (inputs + f32 intermediates + output),
    # with 2x headroom, capped at 48 MiB (v7x physical VMEM is 64 MiB per TC).
    in_bytes = sum(int(a.size) * a.dtype.itemsize
                   for a in (h_p, adj_p, w1_p, b1_p, wl_p, w2_p, b2_p))
    interm_bytes = 4 * (4 * n_p * hid_p) + 4 * n_p * c_p   # H0/aH0/support/Hk + logits (f32)
    out_bytes = 4 * n_p * c_p
    vmem_limit = int(min(max(2 * (in_bytes + interm_bytes + out_bytes), 4 << 20), 48 << 20))

    # Advisory cost hint for XLA scheduling around the custom call.
    flops = (2 * n_p * f_p * hid_p
             + k * (2 * n_p * n_p * hid_p + 2 * n_p * hid_p * hid_p)
             + 2 * n_p * hid_p * c_p)
    transcendentals = n_p * c_p + n_p
    bytes_accessed = in_bytes + out_bytes

    # Small model: every (padded) operand fits VMEM; single block, no grid tiling.
    full = lambda a: pl.BlockSpec(a.shape, lambda: (0,) * a.ndim)
    out_p = pl.pallas_call(
        kernel,
        out_shape=jax.ShapeDtypeStruct((n_p, c_p), jnp.float32),
        grid=(),
        in_specs=[full(h_p), full(adj_p), full(w1_p), full(b1_p),
                  full(wl_p), full(w2_p), full(b2_p)],
        out_specs=pl.BlockSpec((n_p, c_p), lambda: (0, 0)),
        compiler_params=pltpu.CompilerParams(vmem_limit_bytes=vmem_limit),
        cost_estimate=pl.CostEstimate(
            flops=flops, transcendentals=transcendentals,
            bytes_accessed=bytes_accessed),
    )(h_p, adj_p, w1_p, b1_p, wl_p, w2_p, b2_p)

    return out_p[:n, :classes]


def _reference(h, adj, w1, b1, wl, w2, b2, *, k, alpha, lamda):
    H0 = h @ w1 + b1
    Hk = H0
    eye = jnp.eye(w1.shape[1], dtype=jnp.float32)
    for layer_idx in range(k):
        beta = math.log(lamda / (layer_idx + 1) + 1.0)
        support = (1.0 - alpha) * (adj @ Hk) + alpha * H0
        Hk = jnp.maximum(support @ ((1.0 - beta) * eye + beta * wl[layer_idx]), 0.0)
    logits = Hk @ w2 + b2
    return jax.nn.log_softmax(logits, axis=1)


if __name__ == "__main__":
    # Hyper-params matching GCNII(features, classes, k, dropout, hidden, alpha, lamda)
    N, FEATURES, CLASSES, K, HIDDEN = 64, 32, 8, 4, 32
    ALPHA, LAMDA = 0.1, 0.5

    key = jax.random.PRNGKey(0)
    k_h, k_adj, k_w1, k_b1, k_wl, k_w2, k_b2 = jax.random.split(key, 7)

    h = jax.random.normal(k_h, (N, FEATURES), dtype=jnp.float32)

    # symmetric, row-normalized-ish adjacency (dense, deterministic)
    a = jax.random.uniform(k_adj, (N, N), dtype=jnp.float32)
    a = (a + a.T) * 0.5 + jnp.eye(N, dtype=jnp.float32)
    adj = a / jnp.sum(a, axis=1, keepdims=True)

    # parameters (stored pre-transposed for x @ W convention)
    w1 = jax.random.normal(k_w1, (FEATURES, HIDDEN), dtype=jnp.float32) * (1.0 / math.sqrt(FEATURES))
    b1 = jax.random.normal(k_b1, (1, HIDDEN), dtype=jnp.float32) * 0.01
    wl = jax.random.normal(k_wl, (K, HIDDEN, HIDDEN), dtype=jnp.float32) * (1.0 / math.sqrt(HIDDEN))
    w2 = jax.random.normal(k_w2, (HIDDEN, CLASSES), dtype=jnp.float32) * (1.0 / math.sqrt(HIDDEN))
    b2 = jax.random.normal(k_b2, (1, CLASSES), dtype=jnp.float32) * 0.01

    ref = _reference(h, adj, w1, b1, wl, w2, b2, k=K, alpha=ALPHA, lamda=LAMDA)

    # f32 matmul path (exact-precision check vs JAX reference)
    out_f32 = gcnii_forward(h, adj, w1, b1, wl, w2, b2,
                            k=K, alpha=ALPHA, lamda=LAMDA, mm_dtype=jnp.float32)
    out_f32 = jax.block_until_ready(out_f32)
    assert out_f32.shape == (N, CLASSES)
    assert jnp.allclose(out_f32, ref, atol=1e-4, rtol=1e-4), "f32 mismatch vs JAX reference"

    # default path: bf16 matmul inputs, f32 accumulation + f32 elementwise (safe on v5e)
    out_bf16 = gcnii_forward(h, adj, w1, b1, wl, w2, b2,
                             k=K, alpha=ALPHA, lamda=LAMDA)
    out_bf16 = jax.block_until_ready(out_bf16)
    assert out_bf16.shape == (N, CLASSES)
    assert bool(jnp.all(jnp.isfinite(out_bf16)))
    assert jnp.allclose(out_bf16, ref, atol=2e-1, rtol=1e-1), "bf16 path diverged"

    print("KERNEL_OK")
</pallas_src>

<mosaic_0001>
module attributes {stable_mosaic.version = 11 : i64} {
  func.func @_gcnii_kernel(%arg0: memref<128x128xf32, #tpu.memory_space<vmem>>, %arg1: memref<128x128xf32, #tpu.memory_space<vmem>>, %arg2: memref<128x128xf32, #tpu.memory_space<vmem>>, %arg3: memref<1x128xf32, #tpu.memory_space<vmem>>, %arg4: memref<4x128x128xf32, #tpu.memory_space<vmem>>, %arg5: memref<128x128xf32, #tpu.memory_space<vmem>>, %arg6: memref<1x128xf32, #tpu.memory_space<vmem>>, %arg7: memref<128x128xf32, #tpu.memory_space<vmem>>) attributes {dimension_semantics = [], scalar_prefetch = 0 : i64, scratch_operands = 0 : i64, tpu.core_type = #tpu.core_type<tc>} {
    %c0 = arith.constant 0 : index
    %c0_0 = arith.constant 0 : index
    %0 = vector.load %arg0[%c0, %c0_0] : memref<128x128xf32, #tpu.memory_space<vmem>>, vector<128x128xf32>
    %c0_1 = arith.constant 0 : index
    %c0_2 = arith.constant 0 : index
    %1 = vector.load %arg2[%c0_1, %c0_2] : memref<128x128xf32, #tpu.memory_space<vmem>>, vector<128x128xf32>
    %cst = arith.constant dense<0.000000e+00> : vector<128x128xf32>
    %2 = tpu.matmul %0, %1, %cst {dimension_numbers = #tpu.dot_dimension_numbers<[1], [0], [0], [1], [0, 0, 1, 1], [], []>} : vector<128x128xf32>, vector<128x128xf32>, vector<128x128xf32> -> vector<128x128xf32>
    %c0_3 = arith.constant 0 : index
    %c0_4 = arith.constant 0 : index
    %3 = vector.load %arg3[%c0_3, %c0_4] : memref<1x128xf32, #tpu.memory_space<vmem>>, vector<1x128xf32>
    %4 = vector.broadcast %3 : vector<1x128xf32> to vector<128x128xf32>
    %5 = arith.addf %2, %4 : vector<128x128xf32>
    %c0_5 = arith.constant 0 : index
    %c0_6 = arith.constant 0 : index
    %6 = vector.load %arg1[%c0_5, %c0_6] : memref<128x128xf32, #tpu.memory_space<vmem>>, vector<128x128xf32>
    %cst_7 = arith.constant 1.000000e-01 : f32
    %7 = vector.broadcast %cst_7 : f32 to vector<128x128xf32>
    %8 = arith.mulf %7, %5 : vector<128x128xf32>
    %cst_8 = arith.constant dense<0.000000e+00> : vector<128x128xf32>
    %9 = tpu.matmul %6, %5, %cst_8 {dimension_numbers = #tpu.dot_dimension_numbers<[1], [0], [0], [1], [0, 0, 1, 1], [], []>} : vector<128x128xf32>, vector<128x128xf32>, vector<128x128xf32> -> vector<128x128xf32>
    %cst_9 = arith.constant 0.899999976 : f32
    %10 = vector.broadcast %cst_9 : f32 to vector<128x128xf32>
    %11 = arith.mulf %10, %9 : vector<128x128xf32>
    %12 = arith.addf %11, %8 : vector<128x128xf32>
    %c0_10 = arith.constant 0 : index
    %c0_11 = arith.constant 0 : index
    %c0_12 = arith.constant 0 : index
    %13 = vector.load %arg4[%c0_10, %c0_11, %c0_12] : memref<4x128x128xf32, #tpu.memory_space<vmem>>, vector<1x128x128xf32>
    %14 = vector.shape_cast %13 : vector<1x128x128xf32> to vector<128x128xf32>
    %cst_13 = arith.constant dense<0.000000e+00> : vector<128x128xf32>
    %15 = tpu.matmul %12, %14, %cst_13 {dimension_numbers = #tpu.dot_dimension_numbers<[1], [0], [0], [1], [0, 0, 1, 1], [], []>} : vector<128x128xf32>, vector<128x128xf32>, vector<128x128xf32> -> vector<128x128xf32>
    %cst_14 = arith.constant 0.594534874 : f32
    %16 = vector.broadcast %cst_14 : f32 to vector<128x128xf32>
    %17 = arith.mulf %16, %12 : vector<128x128xf32>
    %cst_15 = arith.constant 0.405465096 : f32
    %18 = vector.broadcast %cst_15 : f32 to vector<128x128xf32>
    %19 = arith.mulf %18, %15 : vector<128x128xf32>
    %20 = arith.addf %17, %19 : vector<128x128xf32>
    %cst_16 = arith.constant 0.000000e+00 : f32
    %21 = vector.broadcast %cst_16 : f32 to vector<128x128xf32>
    %22 = arith.maximumf %20, %21 : vector<128x128xf32>
    %cst_17 = arith.constant dense<0.000000e+00> : vector<128x128xf32>
    %23 = tpu.matmul %6, %22, %cst_17 {dimension_numbers = #tpu.dot_dimension_numbers<[1], [0], [0], [1], [0, 0, 1, 1], [], []>} : vector<128x128xf32>, vector<128x128xf32>, vector<128x128xf32> -> vector<128x128xf32>
    %cst_18 = arith.constant 0.899999976 : f32
    %24 = vector.broadcast %cst_18 : f32 to vector<128x128xf32>
    %25 = arith.mulf %24, %23 : vector<128x128xf32>
    %26 = arith.addf %25, %8 : vector<128x128xf32>
    %c1 = arith.constant 1 : index
    %c0_19 = arith.constant 0 : index
    %c0_20 = arith.constant 0 : index
    %27 = vector.load %arg4[%c1, %c0_19, %c0_20] : memref<4x128x128xf32, #tpu.memory_space<vmem>>, vector<1x128x128xf32>
    %28 = vector.shape_cast %27 : vector<1x128x128xf32> to vector<128x128xf32>
    %cst_21 = arith.constant dense<0.000000e+00> : vector<128x128xf32>
    %29 = tpu.matmul %26, %28, %cst_21 {dimension_numbers = #tpu.dot_dimension_numbers<[1], [0], [0], [1], [0, 0, 1, 1], [], []>} : vector<128x128xf32>, vector<128x128xf32>, vector<128x128xf32> -> vector<128x128xf32>
    %cst_22 = arith.constant 0.776856422 : f32
    %30 = vector.broadcast %cst_22 : f32 to vector<128x128xf32>
    %31 = arith.mulf %30, %26 : vector<128x128xf32>
    %cst_23 = arith.constant 0.223143548 : f32
    %32 = vector.broadcast %cst_23 : f32 to vector<128x128xf32>
    %33 = arith.mulf %32, %29 : vector<128x128xf32>
    %34 = arith.addf %31, %33 : vector<128x128xf32>
    %cst_24 = arith.constant 0.000000e+00 : f32
    %35 = vector.broadcast %cst_24 : f32 to vector<128x128xf32>
    %36 = arith.maximumf %34, %35 : vector<128x128xf32>
    %cst_25 = arith.constant dense<0.000000e+00> : vector<128x128xf32>
    %37 = tpu.matmul %6, %36, %cst_25 {dimension_numbers = #tpu.dot_dimension_numbers<[1], [0], [0], [1], [0, 0, 1, 1], [], []>} : vector<128x128xf32>, vector<128x128xf32>, vector<128x128xf32> -> vector<128x128xf32>
    %cst_26 = arith.constant 0.899999976 : f32
    %38 = vector.broadcast %cst_26 : f32 to vector<128x128xf32>
    %39 = arith.mulf %38, %37 : vector<128x128xf32>
    %40 = arith.addf %39, %8 : vector<128x128xf32>
    %c2 = arith.constant 2 : index
    %c0_27 = arith.constant 0 : index
    %c0_28 = arith.constant 0 : index
    %41 = vector.load %arg4[%c2, %c0_27, %c0_28] : memref<4x128x128xf32, #tpu.memory_space<vmem>>, vector<1x128x128xf32>
    %42 = vector.shape_cast %41 : vector<1x128x128xf32> to vector<128x128xf32>
    %cst_29 = arith.constant dense<0.000000e+00> : vector<128x128xf32>
    %43 = tpu.matmul %40, %42, %cst_29 {dimension_numbers = #tpu.dot_dimension_numbers<[1], [0], [0], [1], [0, 0, 1, 1], [], []>} : vector<128x128xf32>, vector<128x128xf32>, vector<128x128xf32> -> vector<128x128xf32>
    %cst_30 = arith.constant 0.845849335 : f32
    %44 = vector.broadcast %cst_30 : f32 to vector<128x128xf32>
    %45 = arith.mulf %44, %40 : vector<128x128xf32>
    %cst_31 = arith.constant 0.15415068 : f32
    %46 = vector.broadcast %cst_31 : f32 to vector<128x128xf32>
    %47 = arith.mulf %46, %43 : vector<128x128xf32>
    %48 = arith.addf %45, %47 : vector<128x128xf32>
    %cst_32 = arith.constant 0.000000e+00 : f32
    %49 = vector.broadcast %cst_32 : f32 to vector<128x128xf32>
    %50 = arith.maximumf %48, %49 : vector<128x128xf32>
    %cst_33 = arith.constant dense<0.000000e+00> : vector<128x128xf32>
    %51 = tpu.matmul %6, %50, %cst_33 {dimension_numbers = #tpu.dot_dimension_numbers<[1], [0], [0], [1], [0, 0, 1, 1], [], []>} : vector<128x128xf32>, vector<128x128xf32>, vector<128x128xf32> -> vector<128x128xf32>
    %cst_34 = arith.constant 0.899999976 : f32
    %52 = vector.broadcast %cst_34 : f32 to vector<128x128xf32>
    %53 = arith.mulf %52, %51 : vector<128x128xf32>
    %54 = arith.addf %53, %8 : vector<128x128xf32>
    %c3 = arith.constant 3 : index
    %c0_35 = arith.constant 0 : index
    %c0_36 = arith.constant 0 : index
    %55 = vector.load %arg4[%c3, %c0_35, %c0_36] : memref<4x128x128xf32, #tpu.memory_space<vmem>>, vector<1x128x128xf32>
    %56 = vector.shape_cast %55 : vector<1x128x128xf32> to vector<128x128xf32>
    %cst_37 = arith.constant dense<0.000000e+00> : vector<128x128xf32>
    %57 = tpu.matmul %54, %56, %cst_37 {dimension_numbers = #tpu.dot_dimension_numbers<[1], [0], [0], [1], [0, 0, 1, 1], [], []>} : vector<128x128xf32>, vector<128x128xf32>, vector<128x128xf32> -> vector<128x128xf32>
    %cst_38 = arith.constant 0.882216989 : f32
    %58 = vector.broadcast %cst_38 : f32 to vector<128x128xf32>
    %59 = arith.mulf %58, %54 : vector<128x128xf32>
    %cst_39 = arith.constant 0.117783032 : f32
    %60 = vector.broadcast %cst_39 : f32 to vector<128x128xf32>
    %61 = arith.mulf %60, %57 : vector<128x128xf32>
    %62 = arith.addf %59, %61 : vector<128x128xf32>
    %cst_40 = arith.constant 0.000000e+00 : f32
    %63 = vector.broadcast %cst_40 : f32 to vector<128x128xf32>
    %64 = arith.maximumf %62, %63 : vector<128x128xf32>
    %c0_41 = arith.constant 0 : index
    %c0_42 = arith.constant 0 : index
    %65 = vector.load %arg5[%c0_41, %c0_42] : memref<128x128xf32, #tpu.memory_space<vmem>>, vector<128x128xf32>
    %cst_43 = arith.constant dense<0.000000e+00> : vector<128x128xf32>
    %66 = tpu.matmul %64, %65, %cst_43 {dimension_numbers = #tpu.dot_dimension_numbers<[1], [0], [0], [1], [0, 0, 1, 1], [], []>} : vector<128x128xf32>, vector<128x128xf32>, vector<128x128xf32> -> vector<128x128xf32>
    %c0_44 = arith.constant 0 : index
    %c0_45 = arith.constant 0 : index
    %67 = vector.load %arg6[%c0_44, %c0_45] : memref<1x128xf32, #tpu.memory_space<vmem>>, vector<1x128xf32>
    %68 = vector.broadcast %67 : vector<1x128xf32> to vector<128x128xf32>
    %69 = arith.addf %66, %68 : vector<128x128xf32>
    %cst_46 = arith.constant dense<0xFF800000> : vector<128xf32>
    %70 = vector.multi_reduction <maximumf>, %69, %cst_46 [1] : vector<128x128xf32> to vector<128xf32>
    %71 = vector.shape_cast %70 : vector<128xf32> to vector<128x1xf32>
    %72 = vector.broadcast %71 : vector<128x1xf32> to vector<128x128xf32>
    %73 = arith.subf %69, %72 : vector<128x128xf32>
    %74 = math.exp %73 : vector<128x128xf32>
    %cst_47 = arith.constant dense<0.000000e+00> : vector<128xf32>
    %75 = vector.multi_reduction <add>, %74, %cst_47 [1] : vector<128x128xf32> to vector<128xf32>
    %76 = vector.shape_cast %75 : vector<128xf32> to vector<128x1xf32>
    %77 = math.log %76 : vector<128x1xf32>
    %78 = vector.broadcast %77 : vector<128x1xf32> to vector<128x128xf32>
    %79 = arith.subf %73, %78 : vector<128x128xf32>
    %c0_48 = arith.constant 0 : index
    %c0_49 = arith.constant 0 : index
    %80 = vector.load %arg7[%c0_48, %c0_49] : memref<128x128xf32, #tpu.memory_space<vmem>>, vector<128x128xf32>
    tpu.vector_store %arg7[%c0_48, %c0_49], %79 {strides = array<i32>} : memref<128x128xf32, #tpu.memory_space<vmem>>, vector<128x128xf32>,
    return
  }
}

</mosaic_0001>

<bundles_post_ra>
// kernel: tpu_custom_call.1
= control target key start
LH: loop header
LB: loop body
LE: loop exit
PB: predicated region body
PF: predicated region fallthrough
CT: control target
= control target key end

     0   :  { %12 = vsyncpa [#allocation3], 0  ;;  %s4073_s0 = inlined_call_operand.hbm [shape: f32[128,128], index: 0, kind: input, shape index: {}]   ;;  %s4074_s1 = inlined_call_operand.hbm [shape: f32[128,128], index: 1, kind: input, shape index: {}]   ;;  %s4075_s2 = inlined_call_operand.hbm [shape: f32[128,128], index: 2, kind: input, shape index: {}]   ;;  %s4076_s3 = inlined_call_operand.vmem [shape: f32[1,128], index: 3, kind: input, shape index: {}]   ;;  %s4077_s4 = inlined_call_operand.hbm [shape: f32[4,128,128], index: 4, kind: input, shape index: {}]   ;;  %s4078_s5 = inlined_call_operand.hbm [shape: f32[128,128], index: 5, kind: input, shape index: {}]   ;;  %s4079_s6 = inlined_call_operand.vmem [shape: f32[1,128], index: 6, kind: input, shape index: {}]   ;;  %s4080_s7 = inlined_call_operand.hbm [shape: f32[128,128], index: 7, kind: output, shape index: {}]  }
   0x1   :  { %13 = vsyncpa [#allocation6], 0 }
   0x2   :  { %14 = vsyncpa [#allocation9], 0 }
   0x3   :  { %15 = vsyncpa [#allocation4], 0  ;;  %s3383_s24 = smov [#allocation5]   ;;  %s3384_s26 = smov [#allocation8]  }
   0x4   :  { %s33_s25 = sshll.u32 %s3383_s24, 4  ;;  %s59_s27 = sshll.u32 %s3384_s26, 4  ;;  %s34_s25 = int_to_ptr.vmem [resolvable:$true] %s33_s25  ;;  %s60_s27 = int_to_ptr.vmem [resolvable:$true] %s59_s27 }
   0x5   :  { %s3263_s28 = scalar_lea.vmem %s34_s25, 2048  ;;  %p3268_p1 = scmp.lt.s32.totalorder %s34_s25, %s34_s25 }
   0x6   :  { %p3264_p0 = scmp.ne.s32.totalorder %s34_s25, %s3263_s28  ;;  %p3269_p2 = scmp.lt.s32.totalorder %s3263_s28, %s3263_s28 }
   0x8   :  { %p3270_p3 = por %p3269_p2, %p3268_p1 }
   0xa   :  { %p3271_p4 = pnand %p3270_p3, %p3264_p0 }
   0xc   :  { %3274 = shalt.err (!%p3271_p4)
}
   0xd   :  { %s3385_s29 = smov 128   ;;  %s3386_s30 = smov 8  }
   0xe   :  { %39 = dma.hbm_to_vmem [thread:$0]  %s4074_s1, 2048, %s34_s25, [#allocation6], %s3385_s29, %s3385_s29, %s3386_s30  }
   0xf   :  { %s3283_s10 = scalar_lea.vmem %s60_s27, 8192  ;;  %p3288_p6 = scmp.lt.s32.totalorder %s60_s27, %s60_s27 }
  0x10   :  { %p3284_p5 = scmp.ne.s32.totalorder %s60_s27, %s3283_s10  ;;  %p3289_p7 = scmp.lt.s32.totalorder %s3283_s10, %s3283_s10 }
  0x12   :  { %p3290_p8 = por %p3289_p7, %p3288_p6 }
  0x14   :  { %p3291_p9 = pnand %p3290_p8, %p3284_p5 }
  0x16   :  { %3294 = shalt.err (!%p3291_p9)
}
  0x17   :  { %65 = dma.hbm_to_vmem [thread:$0]  %s4077_s4, 8192, %s60_s27, [#allocation9], %s3385_s29, %s3385_s29, %s3386_s30  }
  0x18   :  { %s3387_s13 = smov [#allocation2]   ;;  %s3388_s15 = smov [#allocation7]  }
  0x19   :  { %s21_s14 = sshll.u32 %s3387_s13, 4  ;;  %s45_s16 = sshll.u32 %s3388_s15, 4  ;;  %s22_s14 = int_to_ptr.vmem [resolvable:$true] %s21_s14  ;;  %s46_s16 = int_to_ptr.vmem [resolvable:$true] %s45_s16 }
  0x1a   :  { %s3303_s1 = scalar_lea.vmem %s22_s14, 2048  ;;  %p3308_p11 = scmp.lt.s32.totalorder %s22_s14, %s22_s14 }
  0x1b   :  { %p3304_p10 = scmp.ne.s32.totalorder %s22_s14, %s3303_s1  ;;  %p3309_p12 = scmp.lt.s32.totalorder %s3303_s1, %s3303_s1 }
  0x1d   :  { %p3310_p13 = por %p3309_p12, %p3308_p11 }
  0x1f   :  { %p3311_p0 = pnand %p3310_p13, %p3304_p10 }
  0x21   :  { %3314 = shalt.err (!%p3311_p0)
}
  0x22   :  { %27 = dma.hbm_to_vmem [thread:$0]  %s4073_s0, 2048, %s22_s14, [#allocation3], %s3385_s29, %s3385_s29, %s3386_s30  }
  0x23   :  { %s3323_s4 = scalar_lea.vmem %s46_s16, 2048  ;;  %p3328_p2 = scmp.lt.s32.totalorder %s46_s16, %s46_s16 }
  0x24   :  { %p3324_p1 = scmp.ne.s32.totalorder %s46_s16, %s3323_s4  ;;  %p3329_p3 = scmp.lt.s32.totalorder %s3323_s4, %s3323_s4 }
  0x26   :  { %p3330_p4 = por %p3329_p3, %p3328_p2 }
  0x28   :  { %p3331_p5 = pnand %p3330_p4, %p3324_p1 }
  0x2a   :  { %3334 = shalt.err (!%p3331_p5)
}
  0x2b   :  { %51 = dma.hbm_to_vmem [thread:$0]  %s4075_s2, 2048, %s46_s16, [#allocation6], %s3385_s29, %s3385_s29, %s3386_s30  }
  0x2c   :  { %s3389_s21 = smov [#allocation10]  }
  0x2d   :  { %s71_s22 = sshll.u32 %s3389_s21, 4  ;;  %s72_s22 = int_to_ptr.vmem [resolvable:$true] %s71_s22 }
  0x2e   :  { %s3343_s23 = scalar_lea.vmem %s72_s22, 2048  ;;  %p3348_p7 = scmp.lt.s32.totalorder %s72_s22, %s72_s22 }
  0x2f   :  { %p3344_p6 = scmp.ne.s32.totalorder %s72_s22, %s3343_s23  ;;  %p3349_p8 = scmp.lt.s32.totalorder %s3343_s23, %s3343_s23 }
  0x31   :  { %p3350_p9 = por %p3349_p8, %p3348_p7 }
  0x33   :  { %p3351_p10 = pnand %p3350_p9, %p3344_p6 }
  0x35   :  { %3354 = shalt.err (!%p3351_p10)
}
  0x36   :  { %77 = dma.hbm_to_vmem [thread:$0]  %s4078_s5, 2048, %s72_s22, [#allocation9], %s3385_s29, %s3385_s29, %s3386_s30  }
  0x37   :  { %3375 = dma.done.wait [#allocation3], 2048  }
  0x38   :  { %3376 = vsyncadd [#allocation3], 4294965248 }
  0x39   :  { %3377 = dma.done.wait [#allocation6], 4096  }
  0x3a   :  { %3378 = vsyncadd [#allocation6], 4294963200 }
  0x3b   :  { %3379 = dma.done.wait [#allocation9], 10240  }
  0x3c   :  { %3380 = vsyncadd [#allocation9], 4294957056  ;;  %v126_v0 = vld [vmem:[#allocation7 + $0x78] sm:$0xff]  ;;  %v125_v1 = vld [vmem:[#allocation7 + $0x70] sm:$0xff] }
  0x3d   :  { %2607 = vmatprep.subr.mxu0 %v126_v0  ;;  %v124_v2 = vld [vmem:[#allocation7 + $0x68] sm:$0xff]  ;;  %v123_v3 = vld [vmem:[#allocation7 + $0x60] sm:$0xff]  ;;  %v122_v5 = vld [vmem:[#allocation7 + $0x58] sm:$0xff] }
  0x3e   :  { %2608 = vmatpush3.msra.mxu0 %v126_v0  ;;  %v95_v4 = vld [vmem:[#allocation2] sm:$0xff]  ;;  %v121_v6 = vld [vmem:[#allocation7 + $0x50] sm:$0xff]  ;;  %v120_v7 = vld [vmem:[#allocation7 + $0x48] sm:$0xff] }
  0x3f   :  { %2609 = vmatprep.subr.mxu0 %v125_v1  ;;  %2639 = vmatprep.mubr.f32.mxu0 %v95_v4  ;;  %v119_v8 = vld [vmem:[#allocation7 + $0x40] sm:$0xff]  ;;  %v118_v9 = vld [vmem:[#allocation7 + $0x38] sm:$0xff]  ;;  %v117_v10 = vld [vmem:[#allocation7 + $0x30] sm:$0xff] }
  0x40   :  { %2610 = vmatpush3.msra.mxu0 %v125_v1  ;;  %v116_v11 = vld [vmem:[#allocation7 + $0x28] sm:$0xff]  ;;  %v115_v12 = vld [vmem:[#allocation7 + $0x20] sm:$0xff]  ;;  %v114_v13 = vld [vmem:[#allocation7 + $0x18] sm:$0xff] }
  0x41   :  { %2611 = vmatprep.subr.mxu0 %v124_v2  ;;  %v113_v14 = vld [vmem:[#allocation7 + $0x10] sm:$0xff]  ;;  %v112_v15 = vld [vmem:[#allocation7 + $0x8] sm:$0xff]  ;;  %v111_v16 = vld [vmem:[#allocation7] sm:$0xff] }
  0x42   :  { %2612 = vmatpush3.msra.mxu0 %v124_v2  ;;  %v96_v17 = vld [vmem:[#allocation2 + $0x8] sm:$0xff]  ;;  %v97_v18 = vld [vmem:[#allocation2 + $0x10] sm:$0xff]  ;;  %v98_v19 = vld [vmem:[#allocation2 + $0x18] sm:$0xff] }
  0x43   :  { %2613 = vmatprep.subr.mxu0 %v123_v3  ;;  %v99_v20 = vld [vmem:[#allocation2 + $0x20] sm:$0xff]  ;;  %v100_v21 = vld [vmem:[#allocation2 + $0x28] sm:$0xff]  ;;  %v101_v22 = vld [vmem:[#allocation2 + $0x30] sm:$0xff] }
  0x44   :  { %2614 = vmatpush3.msra.mxu0 %v123_v3  ;;  %v102_v23 = vld [vmem:[#allocation2 + $0x38] sm:$0xff]  ;;  %v103_v24 = vld [vmem:[#allocation2 + $0x40] sm:$0xff]  ;;  %v104_v25 = vld [vmem:[#allocation2 + $0x48] sm:$0xff] }
  0x45   :  { %2615 = vmatprep.subr.mxu0 %v122_v5  ;;  %v105_v26 = vld [vmem:[#allocation2 + $0x50] sm:$0xff]  ;;  %v106_v27 = vld [vmem:[#allocation2 + $0x58] sm:$0xff]  ;;  %v107_v28 = vld [vmem:[#allocation2 + $0x60] sm:$0xff] }
  0x46   :  { %2616 = vmatpush3.msra.mxu0 %v122_v5  ;;  %v108_v29 = vld [vmem:[#allocation2 + $0x68] sm:$0xff]  ;;  %v109_v30 = vld [vmem:[#allocation2 + $0x70] sm:$0xff]  ;;  %v110_v31 = vld [vmem:[#allocation2 + $0x78] sm:$0xff] }
  0x47   :  { %2617 = vmatprep.subr.mxu0 %v121_v6  ;;  %v3461_v32 = vld [vmem:[#allocation5] sm:$0xff]  ;;  %v503_v33 = vld [vmem:[#allocation8 + $0x78] sm:$0xff]  ;;  %v502_v34 = vld [vmem:[#allocation8 + $0x70] sm:$0xff] }
  0x48   :  { %2618 = vmatpush3.msra.mxu0 %v121_v6  ;;  %2695 = vmatprep.mubr.f32.mxu1 %v3461_v32  ;;  %v501_v35 = vld [vmem:[#allocation8 + $0x68] sm:$0xff]  ;;  %v500_v36 = vld [vmem:[#allocation8 + $0x60] sm:$0xff]  ;;  %v499_v37 = vld [vmem:[#allocation8 + $0x58] sm:$0xff] }
  0x49   :  { %2619 = vmatprep.subr.mxu0 %v120_v7  ;;  %v498_v38 = vld [vmem:[#allocation8 + $0x50] sm:$0xff]  ;;  %v497_v39 = vld [vmem:[#allocation8 + $0x48] sm:$0xff]  ;;  %v496_v40 = vld [vmem:[#allocation8 + $0x40] sm:$0xff] }
  0x4a   :  { %2620 = vmatpush3.msra.mxu0 %v120_v7  ;;  %v495_v41 = vld [vmem:[#allocation8 + $0x38] sm:$0xff]  ;;  %v494_v42 = vld [vmem:[#allocation8 + $0x30] sm:$0xff]  ;;  %v493_v43 = vld [vmem:[#allocation8 + $0x28] sm:$0xff] }
  0x4b   :  { %2621 = vmatprep.subr.mxu0 %v119_v8  ;;  %v492_v44 = vld [vmem:[#allocation8 + $0x20] sm:$0xff] }
  0x4c   :  { %2622 = vmatpush3.msra.mxu0 %v119_v8  ;;  %v2285_v59 = vld [vmem:[%s4076_s3] ss:$0 sm:$0xff] }
  0x4d   :  { %2623 = vmatprep.subr.mxu0 %v118_v9 }
  0x4e   :  { %2624 = vmatpush3.msra.mxu0 %v118_v9 }
  0x4f   :  { %2625 = vmatprep.subr.mxu0 %v117_v10 }
  0x50   :  { %2626 = vmatpush3.msra.mxu0 %v117_v10 }
  0x51   :  { %2627 = vmatprep.subr.mxu0 %v116_v11 }
  0x52   :  { %2628 = vmatpush3.msra.mxu0 %v116_v11 }
  0x53   :  { %2629 = vmatprep.subr.mxu0 %v115_v12 }
  0x54   :  { %2630 = vmatpush3.msra.mxu0 %v115_v12 }
  0x55   :  { %2631 = vmatprep.subr.mxu0 %v114_v13 }
  0x56   :  { %2632 = vmatpush3.msra.mxu0 %v114_v13 }
  0x57   :  { %2633 = vmatprep.subr.mxu0 %v113_v14 }
  0x58   :  { %2634 = vmatpush3.msra.mxu0 %v113_v14  ;;  %v3523_v14 = vld [vmem:[#allocation5 + $0x8] sm:$0xff] }
  0x59   :  { %2635 = vmatprep.subr.mxu0 %v112_v15 }
  0x5a   :  { %2636 = vmatpush3.msra.mxu0 %v112_v15  ;;  %v3525_v15 = vld [vmem:[#allocation5 + $0x10] sm:$0xff] }
  0x5b   :  { %2637 = vmatprep.subr.mxu0 %v111_v16 }
  0x5c   :  { %2638 = vmatpush3.msra.mxu0 %v111_v16  ;;  %v3529_v16 = vld [vmem:[#allocation5 + $0x18] sm:$0xff] }
  0x5d   :  { %2640 = vmatmul.mubr.f32.vlgmr.msra.gmra.mxu0 %v96_v17  ;;  %2719 = vmatprep.subr.mxu0 %v503_v33  ;;  %v3531_v17 = vld [vmem:[#allocation5 + $0x20] sm:$0xff] }
  0x5e   :  { %2642 = vmatprep.mubr.f32.mxu0 %v97_v18  ;;  %2720 = vmatpush3.msra.mxu0 %v503_v33  ;;  %v3535_v18 = vld [vmem:[#allocation5 + $0x28] sm:$0xff]  ;;  %v488_v33 = vld [vmem:[#allocation8] sm:$0xff] }
  0x5f   :  { %2721 = vmatprep.subr.mxu0 %v502_v34 }
  0x60   :  { %2722 = vmatpush3.msra.mxu0 %v502_v34 }
  0x61   :  { %2643 = vmatmul.mubr.f32.gmra.mxu0 %v98_v19  ;;  %2723 = vmatprep.subr.mxu0 %v501_v35  ;;  %v3537_v19 = vld [vmem:[#allocation5 + $0x30] sm:$0xff] }
  0x62   :  { %2645 = vmatprep.mubr.f32.mxu0 %v99_v20  ;;  %2724 = vmatpush3.msra.mxu0 %v501_v35  ;;  %v3541_v20 = vld [vmem:[#allocation5 + $0x38] sm:$0xff] }
  0x63   :  { %2725 = vmatprep.subr.mxu0 %v500_v36 }
  0x64   :  { %2726 = vmatpush3.msra.mxu0 %v500_v36 }
  0x65   :  { %2646 = vmatmul.mubr.f32.gmra.mxu0 %v100_v21  ;;  %2727 = vmatprep.subr.mxu0 %v499_v37  ;;  %v3543_v21 = vld [vmem:[#allocation5 + $0x40] sm:$0xff] }
  0x66   :  { %2648 = vmatprep.mubr.f32.mxu0 %v101_v22  ;;  %2728 = vmatpush3.msra.mxu0 %v499_v37  ;;  %v3547_v22 = vld [vmem:[#allocation5 + $0x48] sm:$0xff] }
  0x67   :  { %2729 = vmatprep.subr.mxu0 %v498_v38 }
  0x68   :  { %2730 = vmatpush3.msra.mxu0 %v498_v38 }
  0x69   :  { %2649 = vmatmul.mubr.f32.gmra.mxu0 %v102_v23  ;;  %2731 = vmatprep.subr.mxu0 %v497_v39  ;;  %v3549_v23 = vld [vmem:[#allocation5 + $0x50] sm:$0xff] }
  0x6a   :  { %2651 = vmatprep.mubr.f32.mxu0 %v103_v24  ;;  %2732 = vmatpush3.msra.mxu0 %v497_v39  ;;  %v3553_v24 = vld [vmem:[#allocation5 + $0x58] sm:$0xff] }
  0x6b   :  { %2733 = vmatprep.subr.mxu0 %v496_v40 }
  0x6c   :  { %2734 = vmatpush3.msra.mxu0 %v496_v40 }
  0x6d   :  { %2652 = vmatmul.mubr.f32.gmra.mxu0 %v104_v25  ;;  %2735 = vmatprep.subr.mxu0 %v495_v41  ;;  %v3555_v25 = vld [vmem:[#allocation5 + $0x60] sm:$0xff] }
  0x6e   :  { %2654 = vmatprep.mubr.f32.mxu0 %v105_v26  ;;  %2736 = vmatpush3.msra.mxu0 %v495_v41  ;;  %v3559_v26 = vld [vmem:[#allocation5 + $0x68] sm:$0xff] }
  0x6f   :  { %2737 = vmatprep.subr.mxu0 %v494_v42 }
  0x70   :  { %2738 = vmatpush3.msra.mxu0 %v494_v42 }
  0x71   :  { %2655 = vmatmul.mubr.f32.gmra.mxu0 %v106_v27  ;;  %2739 = vmatprep.subr.mxu0 %v493_v43  ;;  %v3561_v27 = vld [vmem:[#allocation5 + $0x70] sm:$0xff] }
  0x72   :  { %2657 = vmatprep.mubr.f32.mxu0 %v107_v28  ;;  %2740 = vmatpush3.msra.mxu0 %v493_v43  ;;  %v3565_v28 = vld [vmem:[#allocation5 + $0x78] sm:$0xff] }
  0x73   :  { %2741 = vmatprep.subr.mxu0 %v492_v44 }
  0x74   :  { %2742 = vmatpush3.msra.mxu0 %v492_v44 }
  0x75   :  { %2658 = vmatmul.mubr.f32.gmra.mxu0 %v108_v29  ;;  %v491_v29 = vld [vmem:[#allocation8 + $0x18] sm:$0xff] }
  0x76   :  { %2660 = vmatprep.mubr.f32.mxu0 %v109_v30  ;;  %2743 = vmatprep.subr.mxu0 %v491_v29  ;;  %v490_v30 = vld [vmem:[#allocation8 + $0x10] sm:$0xff] }
  0x77   :  { %2744 = vmatpush3.msra.mxu0 %v491_v29 }
  0x78   :  { %2745 = vmatprep.subr.mxu0 %v490_v30 }
  0x79   :  { %2661 = vmatmul.mubr.f32.gmra.mxu0 %v110_v31  ;;  %v489_v31 = vld [vmem:[#allocation8 + $0x8] sm:$0xff] }
  0x7a   :  { %2746 = vmatpush3.msra.mxu0 %v490_v30 }
  0x7b   :  { %2747 = vmatprep.subr.mxu0 %v489_v31 }
  0x7c   :  { %2748 = vmatpush3.msra.mxu0 %v489_v31 }
  0x7d   :  { %2749 = vmatprep.subr.mxu0 %v488_v33 }
  0x7e   :  { %2750 = vmatpush3.msra.mxu0 %v488_v33 }
 0x11d   :  { %v2641_v45 = vpop.f32.mrf.mxu0 }
 0x11e   :  { %v206_v12 = vadd.f32 %v2641_v45, %v2285_v59 }
 0x11f   :  { %v200_v46 = vpop.f32.mrf.mxu0 }
 0x120   :  { %v201_v13 = vadd.f32 %v2285_v59, %v200_v46  ;;  %v3571_v39 = vmul.f32 0.1, %v206_v12 }
 0x121   :  { %v2644_v47 = vpop.f32.mrf.mxu0 }
 0x122   :  { %v3513_v10 = vadd.f32 %v2644_v47, %v2285_v59  ;;  %v3569_v37 = vmul.f32 0.1, %v201_v13  ;;  %4114 = vst [vmem:[#allocation17_spill] sm:$0xff] %v3571_v39 }
 0x123   :  { %v210_v48 = vpop.f32.mrf.mxu0 }
 0x124   :  { %v3517_v11 = vadd.f32 %v2285_v59, %v210_v48  ;;  %4113 = vst [vmem:[#allocation16_spill] sm:$0xff] %v3569_v37  ;;  %v3584_v47 = vmul.f32 0.1, %v3513_v10 }
 0x125   :  { %v2647_v49 = vpop.f32.mrf.mxu0 }
 0x126   :  { %v3505_v8 = vadd.f32 %v2647_v49, %v2285_v59  ;;  %v3580_v45 = vmul.f32 0.1, %v3517_v11  ;;  %4116 = vst [vmem:[#allocation19_spill] sm:$0xff] %v3584_v47 }
 0x127   :  { %v220_v50 = vpop.f32.mrf.mxu0 }
 0x128   :  { %v3509_v9 = vadd.f32 %v2285_v59, %v220_v50  ;;  %4115 = vst [vmem:[#allocation18_spill] sm:$0xff] %v3580_v45 }
 0x129   :  { %v2650_v51 = vpop.f32.mrf.mxu0 }
 0x12a   :  { %v3497_v6 = vadd.f32 %v2650_v51, %v2285_v59 }
 0x12b   :  { %v230_v52 = vpop.f32.mrf.mxu0 }
 0x12c   :  { %v3501_v7 = vadd.f32 %v2285_v59, %v230_v52 }
 0x12d   :  { %v2653_v53 = vpop.f32.mrf.mxu0 }
 0x12e   :  { %v3489_v4 = vadd.f32 %v2653_v53, %v2285_v59  ;;  %v3594_v53 = vmul.f32 0.1, %v3509_v9 }
 0x12f   :  { %v240_v54 = vpop.f32.mrf.mxu0 }
 0x130   :  { %v3493_v5 = vadd.f32 %v2285_v59, %v240_v54  ;;  %4117 = vst [vmem:[#allocation20_spill] sm:$0xff] %v3594_v53 }
 0x131   :  { %v2656_v55 = vpop.f32.mrf.mxu0 }
 0x132   :  { %v3481_v2 = vadd.f32 %v2656_v55, %v2285_v59  ;;  %v3598_v55 = vmul.f32 0.1, %v3505_v8 }
 0x133   :  { %v250_v56 = vpop.f32.mrf.mxu0 }
 0x134   :  { %v3485_v3 = vadd.f32 %v2285_v59, %v250_v56  ;;  %4118 = vst [vmem:[#allocation21_spill] sm:$0xff] %v3598_v55 }
 0x135   :  { %v2659_v57 = vpop.f32.mrf.mxu0 }
 0x136   :  { %v3473_v0 = vadd.f32 %v2659_v57, %v2285_v59 }
 0x137   :  { %v260_v58 = vpop.f32.mrf.mxu0 }
 0x138   :  { %v3477_v1 = vadd.f32 %v2285_v59, %v260_v58 }
 0x139   :  { %v2662_v60 = vpop.f32.mrf.mxu0 }
 0x13a   :  { %v3467_v61 = vadd.f32 %v2662_v60, %v2285_v59 }
 0x13b   :  { %v270_v62 = vpop.f32.mrf.mxu0 }
 0x13c   :  { %v3469_v63 = vadd.f32 %v2285_v59, %v270_v62  ;;  %2663 = vmatprep.subr.mxu1 %v3467_v61  ;;  %v3608_v62 = vmul.f32 0.1, %v3501_v7 }
 0x13d   :  { %2664 = vmatpush3.msra.mxu1 %v3467_v61 }
 0x13e   :  { %2665 = vmatprep.subr.mxu1 %v3469_v63  ;;  %4119 = vst [vmem:[#allocation22_spill] sm:$0xff] %v3608_v62 }
 0x13f   :  { %2666 = vmatpush3.msra.mxu1 %v3469_v63 }
 0x140   :  { %2667 = vmatprep.subr.mxu1 %v3473_v0 }
 0x141   :  { %2668 = vmatpush3.msra.mxu1 %v3473_v0 }
 0x142   :  { %2669 = vmatprep.subr.mxu1 %v3477_v1 }
 0x143   :  { %2670 = vmatpush3.msra.mxu1 %v3477_v1 }
 0x144   :  { %2671 = vmatprep.subr.mxu1 %v3481_v2 }
 0x145   :  { %2672 = vmatpush3.msra.mxu1 %v3481_v2 }
 0x146   :  { %2673 = vmatprep.subr.mxu1 %v3485_v3 }
 0x147   :  { %2674 = vmatpush3.msra.mxu1 %v3485_v3 }
 0x148   :  { %2675 = vmatprep.subr.mxu1 %v3489_v4 }
 0x149   :  { %2676 = vmatpush3.msra.mxu1 %v3489_v4 }
 0x14a   :  { %2677 = vmatprep.subr.mxu1 %v3493_v5 }
 0x14b   :  { %2678 = vmatpush3.msra.mxu1 %v3493_v5 }
 0x14c   :  { %2679 = vmatprep.subr.mxu1 %v3497_v6 }
 0x14d   :  { %2680 = vmatpush3.msra.mxu1 %v3497_v6 }
 0x14e   :  { %2681 = vmatprep.subr.mxu1 %v3501_v7 }
 0x14f   :  { %2682 = vmatpush3.msra.mxu1 %v3501_v7  ;;  %v3622_v7 = vmul.f32 0.1, %v3493_v5  ;;  %v3636_v5 = vmul.f32 0.1, %v3485_v3  ;;  %v3650_v3 = vmul.f32 0.1, %v3477_v1 }
 0x150   :  { %2683 = vmatprep.subr.mxu1 %v3505_v8  ;;  %v3664_v1 = vmul.f32 0.1, %v3469_v63  ;;  %v904_v63 = vld [vmem:[#allocation8 + $0xe8] sm:$0xff] }
 0x151   :  { %2684 = vmatpush3.msra.mxu1 %v3505_v8  ;;  %v3612_v8 = vmul.f32 0.1, %v3497_v6  ;;  %4121 = vst [vmem:[#allocation24_spill] sm:$0xff] %v3622_v7  ;;  %v3626_v6 = vmul.f32 0.1, %v3489_v4  ;;  %4123 = vst [vmem:[#allocation26_spill] sm:$0xff] %v3636_v5 }
 0x152   :  { %2685 = vmatprep.subr.mxu1 %v3509_v9  ;;  %v3640_v4 = vmul.f32 0.1, %v3481_v2  ;;  %4125 = vst [vmem:[#allocation28_spill] sm:$0xff] %v3650_v3  ;;  %v3654_v2 = vmul.f32 0.1, %v3473_v0  ;;  %4127 = vst [vmem:[#allocation30_spill] sm:$0xff] %v3664_v1 }
 0x153   :  { %2686 = vmatpush3.msra.mxu1 %v3509_v9  ;;  %4120 = vst [vmem:[#allocation23_spill] sm:$0xff] %v3612_v8  ;;  %4122 = vst [vmem:[#allocation25_spill] sm:$0xff] %v3626_v6  ;;  %v3668_v0 = vmul.f32 0.1, %v3467_v61  ;;  %v902_v61 = vld [vmem:[#allocation8 + $0xd8] sm:$0xff] }
 0x154   :  { %2687 = vmatprep.subr.mxu1 %v3513_v10  ;;  %4124 = vst [vmem:[#allocation27_spill] sm:$0xff] %v3640_v4  ;;  %4126 = vst [vmem:[#allocation29_spill] sm:$0xff] %v3654_v2 }
 0x155   :  { %2688 = vmatpush3.msra.mxu1 %v3513_v10  ;;  %4128 = vst [vmem:[#allocation31_spill] sm:$0xff] %v3668_v0 }
 0x156   :  { %2689 = vmatprep.subr.mxu1 %v3517_v11 }
 0x157   :  { %2690 = vmatpush3.msra.mxu1 %v3517_v11 }
 0x158   :  { %2691 = vmatprep.subr.mxu1 %v206_v12 }
 0x159   :  { %2692 = vmatpush3.msra.mxu1 %v206_v12 }
 0x15a   :  { %2693 = vmatprep.subr.mxu1 %v201_v13 }
 0x15b   :  { %2694 = vmatpush3.msra.mxu1 %v201_v13 }
 0x15c   :  { %2696 = vmatmul.mubr.f32.vlgmr.msra.gmra.mxu1 %v3523_v14 }
 0x15d   :  { %2698 = vmatprep.mubr.f32.mxu1 %v3525_v15 }
 0x160   :  { %2699 = vmatmul.mubr.f32.gmra.mxu1 %v3529_v16 }
 0x161   :  { %2701 = vmatprep.mubr.f32.mxu1 %v3531_v17 }
 0x164   :  { %2702 = vmatmul.mubr.f32.gmra.mxu1 %v3535_v18 }
 0x165   :  { %2704 = vmatprep.mubr.f32.mxu1 %v3537_v19 }
 0x168   :  { %2705 = vmatmul.mubr.f32.gmra.mxu1 %v3541_v20 }
 0x169   :  { %2707 = vmatprep.mubr.f32.mxu1 %v3543_v21 }
 0x16c   :  { %2708 = vmatmul.mubr.f32.gmra.mxu1 %v3547_v22 }
 0x16d   :  { %2710 = vmatprep.mubr.f32.mxu1 %v3549_v23 }
 0x170   :  { %2711 = vmatmul.mubr.f32.gmra.mxu1 %v3553_v24 }
 0x171   :  { %2713 = vmatprep.mubr.f32.mxu1 %v3555_v25 }
 0x174   :  { %2714 = vmatmul.mubr.f32.gmra.mxu1 %v3559_v26 }
 0x175   :  { %2716 = vmatprep.mubr.f32.mxu1 %v3561_v27 }
 0x178   :  { %2717 = vmatmul.mubr.f32.gmra.mxu1 %v3565_v28 }
 0x179   :  { %2807 = vmatprep.mubr.f32.mxu1 %v3461_v32 }
 0x21c   :  { %v2697_v34 = vpop.f32.mrf.mxu1 }
 0x21d   :  { %v457_v35 = vmul.f32 0.9, %v2697_v34 }
 0x21e   :  { %v377_v36 = vpop.f32.mrf.mxu1 }
 0x21f   :  { %v456_v38 = vmul.f32 0.9, %v377_v36  ;;  %v3577_v42 = vadd.f32 %v457_v35, %v3571_v39 }
 0x220   :  { %v2700_v40 = vpop.f32.mrf.mxu1 }
 0x221   :  { %v3574_v41 = vadd.f32 %v456_v38, %v3569_v37  ;;  %v459_v43 = vmul.f32 0.9, %v2700_v40 }
 0x222   :  { %v387_v44 = vpop.f32.mrf.mxu1 }
 0x223   :  { %v458_v46 = vmul.f32 0.9, %v387_v44  ;;  %2751 = vmatprep.mubr.f32.mxu0 %v3574_v41  ;;  %v3591_v50 = vadd.f32 %v459_v43, %v3584_v47 }
 0x224   :  { %v2703_v48 = vpop.f32.mrf.mxu1  ;;  %2752 = vmatmul.mubr.f32.vlgmr.msra.gmra.mxu0 %v3577_v42 }
 0x225   :  { %v3588_v49 = vadd.f32 %v458_v46, %v3580_v45  ;;  %v461_v51 = vmul.f32 0.9, %v2703_v48 }
 0x226   :  { %v397_v52 = vpop.f32.mrf.mxu1 }
 0x227   :  { %v460_v54 = vmul.f32 0.9, %v397_v52  ;;  %2754 = vmatprep.mubr.f32.mxu0 %v3588_v49  ;;  %v3605_v58 = vadd.f32 %v461_v51, %v3598_v55 }
 0x228   :  { %v2706_v56 = vpop.f32.mrf.mxu1  ;;  %2755 = vmatmul.mubr.f32.gmra.mxu0 %v3591_v50 }
 0x229   :  { %v3602_v57 = vadd.f32 %v460_v54, %v3594_v53  ;;  %v463_v59 = vmul.f32 0.9, %v2706_v56 }
 0x22a   :  { %v407_v60 = vpop.f32.mrf.mxu1 }
 0x22b   :  { %v462_v9 = vmul.f32 0.9, %v407_v60  ;;  %2757 = vmatprep.mubr.f32.mxu0 %v3602_v57  ;;  %v3619_v12 = vadd.f32 %v463_v59, %v3612_v8 }
 0x22c   :  { %v2709_v10 = vpop.f32.mrf.mxu1  ;;  %2758 = vmatmul.mubr.f32.gmra.mxu0 %v3605_v58 }
 0x22d   :  { %v3616_v11 = vadd.f32 %v462_v9, %v3608_v62  ;;  %v465_v13 = vmul.f32 0.9, %v2709_v10 }
 0x22e   :  { %v417_v29 = vpop.f32.mrf.mxu1 }
 0x22f   :  { %v464_v30 = vmul.f32 0.9, %v417_v29  ;;  %2760 = vmatprep.mubr.f32.mxu0 %v3616_v11  ;;  %v3633_v34 = vadd.f32 %v465_v13, %v3626_v6  ;;  %v906_v29 = vld [vmem:[#allocation8 + $0xf8] sm:$0xff] }
 0x230   :  { %v2712_v31 = vpop.f32.mrf.mxu1  ;;  %2761 = vmatmul.mubr.f32.gmra.mxu0 %v3619_v12  ;;  %2831 = vmatprep.subr.mxu0 %v906_v29 }
 0x231   :  { %v3630_v33 = vadd.f32 %v464_v30, %v3622_v7  ;;  %v467_v35 = vmul.f32 0.9, %v2712_v31  ;;  %v905_v30 = vld [vmem:[#allocation8 + $0xf0] sm:$0xff]  ;;  %2832 = vmatpush3.msra.mxu0 %v906_v29  ;;  %v903_v31 = vld [vmem:[#allocation8 + $0xe0] sm:$0xff] }
 0x232   :  { %v427_v36 = vpop.f32.mrf.mxu1  ;;  %2833 = vmatprep.subr.mxu0 %v905_v30 }
 0x233   :  { %v466_v38 = vmul.f32 0.9, %v427_v36  ;;  %2763 = vmatprep.mubr.f32.mxu0 %v3630_v33  ;;  %v3647_v44 = vadd.f32 %v467_v35, %v3640_v4  ;;  %2834 = vmatpush3.msra.mxu0 %v905_v30  ;;  %v901_v35 = vld [vmem:[#allocation8 + $0xd0] sm:$0xff]  ;;  %v900_v36 = vld [vmem:[#allocation8 + $0xc8] sm:$0xff] }
 0x234   :  { %v2715_v40 = vpop.f32.mrf.mxu1  ;;  %2764 = vmatmul.mubr.f32.gmra.mxu0 %v3633_v34  ;;  %2835 = vmatprep.subr.mxu0 %v904_v63 }
 0x235   :  { %v3644_v43 = vadd.f32 %v466_v38, %v3636_v5  ;;  %v469_v46 = vmul.f32 0.9, %v2715_v40  ;;  %2836 = vmatpush3.msra.mxu0 %v904_v63  ;;  %v899_v38 = vld [vmem:[#allocation8 + $0xc0] sm:$0xff]  ;;  %v898_v40 = vld [vmem:[#allocation8 + $0xb8] sm:$0xff]  ;;  %v660_v45 = vmul.f32 0.5945349, %v3647_v44 }
 0x236   :  { %v437_v48 = vpop.f32.mrf.mxu1  ;;  %2837 = vmatprep.subr.mxu0 %v903_v31 }
 0x237   :  { %v468_v51 = vmul.f32 0.9, %v437_v48  ;;  %2766 = vmatprep.mubr.f32.mxu0 %v3644_v43  ;;  %v3661_v56 = vadd.f32 %v469_v46, %v3654_v2  ;;  %2838 = vmatpush3.msra.mxu0 %v903_v31  ;;  %v897_v46 = vld [vmem:[#allocation8 + $0xb0] sm:$0xff]  ;;  %v896_v48 = vld [vmem:[#allocation8 + $0xa8] sm:$0xff] }
 0x238   :  { %v2718_v52 = vpop.f32.mrf.mxu1  ;;  %2767 = vmatmul.mubr.f32.gmra.mxu0 %v3647_v44  ;;  %2839 = vmatprep.subr.mxu0 %v902_v61 }
 0x239   :  { %v3658_v54 = vadd.f32 %v468_v51, %v3650_v3  ;;  %v471_v59 = vmul.f32 0.9, %v2718_v52  ;;  %2840 = vmatpush3.msra.mxu0 %v902_v61  ;;  %v895_v51 = vld [vmem:[#allocation8 + $0xa0] sm:$0xff]  ;;  %v662_v2 = vmul.f32 0.5945349, %v3661_v56 }
 0x23a   :  { %v447_v60 = vpop.f32.mrf.mxu1  ;;  %2841 = vmatprep.subr.mxu0 %v901_v35 }
 0x23b   :  { %v470_v9 = vmul.f32 0.9, %v447_v60  ;;  %2769 = vmatprep.mubr.f32.mxu0 %v3658_v54  ;;  %v487_v13 = vadd.f32 %v471_v59, %v3668_v0  ;;  %2842 = vmatpush3.msra.mxu0 %v901_v35  ;;  %v661_v8 = vmul.f32 0.5945349, %v3658_v54 }
 0x23c   :  { %2770 = vmatmul.mubr.f32.gmra.mxu0 %v3661_v56  ;;  %2843 = vmatprep.subr.mxu0 %v900_v36 }
 0x23d   :  { %v486_v10 = vadd.f32 %v470_v9, %v3664_v1  ;;  %2844 = vmatpush3.msra.mxu0 %v900_v36  ;;  %v664_v0 = vmul.f32 0.5945349, %v487_v13 }
 0x23e   :  { %2845 = vmatprep.subr.mxu0 %v899_v38 }
 0x23f   :  { %2772 = vmatprep.mubr.f32.mxu0 %v486_v10  ;;  %2846 = vmatpush3.msra.mxu0 %v899_v38  ;;  %v663_v6 = vmul.f32 0.5945349, %v486_v10 }
 0x240   :  { %2773 = vmatmul.mubr.f32.gmra.mxu0 %v487_v13  ;;  %2847 = vmatprep.subr.mxu0 %v898_v40 }
 0x241   :  { %2848 = vmatpush3.msra.mxu0 %v898_v40 }
 0x242   :  { %2849 = vmatprep.subr.mxu0 %v897_v46 }
 0x243   :  { %2850 = vmatpush3.msra.mxu0 %v897_v46 }
 0x244   :  { %2851 = vmatprep.subr.mxu0 %v896_v48 }
 0x245   :  { %2852 = vmatpush3.msra.mxu0 %v896_v48 }
 0x246   :  { %2853 = vmatprep.subr.mxu0 %v895_v51 }
 0x247   :  { %2854 = vmatpush3.msra.mxu0 %v895_v51 }
 0x2e4   :  { %v3673_v52 = vpop.f32.mrf.mxu0 }
 0x2e6   :  { %v3675_v59 = vpop.f32.mrf.mxu0 }
 0x2e8   :  { %v3677_v60 = vpop.f32.mrf.mxu0 }
 0x2ea   :  { %v3679_v9 = vpop.f32.mrf.mxu0 }
 0x2ec   :  { %v2759_v29 = vpop.f32.mrf.mxu0 }
 0x2ee   :  { %v590_v30 = vpop.f32.mrf.mxu0 }
 0x2f0   :  { %v2762_v63 = vpop.f32.mrf.mxu0 }
 0x2f2   :  { %v600_v31 = vpop.f32.mrf.mxu0 }
 0x2f4   :  { %v2765_v61 = vpop.f32.mrf.mxu0 }
 0x2f5   :  { %v674_v13 = vmul.f32 0.4054651, %v2765_v61 }
 0x2f6   :  { %v610_v35 = vpop.f32.mrf.mxu0 }
 0x2f7   :  { %v673_v54 = vmul.f32 0.4054651, %v610_v35 }
 0x2f8   :  { %v2768_v36 = vpop.f32.mrf.mxu0 }
 0x2f9   :  { %v676_v62 = vmul.f32 0.4054651, %v2768_v36  ;;  %v651_v36 = vmul.f32 0.5945349, %v3588_v49 }
 0x2fa   :  { %v620_v38 = vpop.f32.mrf.mxu0 }
 0x2fb   :  { %v675_v39 = vmul.f32 0.4054651, %v620_v38  ;;  %v692_v56 = vadd.f32 %v676_v62, %v660_v45  ;;  %v656_v45 = vmul.f32 0.5945349, %v3619_v12  ;;  %v668_v12 = vmul.f32 0.4054651, %v3677_v60 }
 0x2fc   :  { %v2771_v40 = vpop.f32.mrf.mxu0  ;;  %v665_v38 = vmul.f32 0.4054651, %v3675_v59  ;;  %v891_v59 = vld [vmem:[#allocation8 + $0x80] sm:$0xff] }
 0x2fd   :  { %v678_v51 = vmul.f32 0.4054651, %v2771_v40 }
 0x2fe   :  { %v630_v46 = vpop.f32.mrf.mxu0 }
 0x2ff   :  { %v677_v4 = vmul.f32 0.4054651, %v630_v46  ;;  %v694_v55 = vadd.f32 %v678_v51, %v662_v2  ;;  %v659_v46 = vmul.f32 0.5945349, %v3644_v43  ;;  %v654_v43 = vmul.f32 0.5945349, %v3605_v58 }
 0x300   :  { %v2774_v48 = vpop.f32.mrf.mxu0  ;;  %v666_v58 = vmul.f32 0.4054651, %v3673_v52  ;;  %v649_v51 = vmul.f32 0.5945349, %v3574_v41  ;;  %v892_v41 = vld [vmem:[#allocation8 + $0x88] sm:$0xff] }
 0x301   :  { %v680_v1 = vmul.f32 0.4054651, %v2774_v48  ;;  %v693_v37 = vadd.f32 %v677_v4, %v661_v8  ;;  %v691_v2 = vadd.f32 %v675_v39, %v659_v46  ;;  %v708_v8 = vmax.f32 %v692_v56, 0.0 }
 0x302   :  { %v640_v3 = vpop.f32.mrf.mxu0  ;;  %v681_v52 = vadd.f32 %v665_v38, %v649_v51  ;;  %v4137_v38 = vld [vmem:[#allocation24_spill] sm:$0xff] }
 0x303   :  { %v696_v5 = vadd.f32 %v680_v1, %v664_v0  ;;  %v679_v7 = vmul.f32 0.4054651, %v640_v3  ;;  %v710_v1 = vmax.f32 %v694_v55, 0.0  ;;  %v658_v3 = vmul.f32 0.5945349, %v3633_v34 }
 0x304   :  { %v707_v62 = vmax.f32 %v691_v2, 0.0  ;;  %v670_v34 = vmul.f32 0.4054651, %v2759_v29  ;;  %v667_v29 = vmul.f32 0.4054651, %v3679_v9  ;;  %v4129_v2 = vld [vmem:[#allocation16_spill] sm:$0xff] }
 0x305   :  { %v712_v53 = vmax.f32 %v696_v5, 0.0  ;;  %v695_v47 = vadd.f32 %v679_v7, %v663_v6  ;;  %v709_v5 = vmax.f32 %v693_v37, 0.0  ;;  %v672_v7 = vmul.f32 0.4054651, %v2762_v63 }
 0x306   :  { %v690_v6 = vadd.f32 %v674_v13, %v658_v3  ;;  %v655_v37 = vmul.f32 0.5945349, %v3616_v11  ;;  %v686_v10 = vadd.f32 %v670_v34, %v654_v43  ;;  %v653_v63 = vmul.f32 0.5945349, %v3602_v57 }
 0x307   :  { %v711_v40 = vmax.f32 %v695_v47, 0.0  ;;  %2775 = vmatprep.subr.mxu1 %v712_v53  ;;  %v657_v47 = vmul.f32 0.5945349, %v3630_v33  ;;  %v688_v4 = vadd.f32 %v672_v7, %v656_v45  ;;  %v669_v33 = vmul.f32 0.4054651, %v590_v30 }
 0x308   :  { %2776 = vmatpush3.msra.mxu1 %v712_v53  ;;  %v671_v53 = vmul.f32 0.4054651, %v600_v31  ;;  %v706_v39 = vmax.f32 %v690_v6, 0.0  ;;  %v652_v11 = vmul.f32 0.5945349, %v3591_v50  ;;  %v702_v60 = vmax.f32 %v686_v10, 0.0 }
 0x309   :  { %2777 = vmatprep.subr.mxu1 %v711_v40  ;;  %v689_v55 = vadd.f32 %v673_v54, %v657_v47  ;;  %v704_v31 = vmax.f32 %v688_v4, 0.0  ;;  %v685_v61 = vadd.f32 %v669_v33, %v653_v63  ;;  %v650_v57 = vmul.f32 0.5945349, %v3577_v42  ;;  %v4133_v33 = vld [vmem:[#allocation20_spill] sm:$0xff] }
 0x30a   :  { %2778 = vmatpush3.msra.mxu1 %v711_v40  ;;  %v687_v44 = vadd.f32 %v671_v53, %v655_v37  ;;  %v684_v30 = vadd.f32 %v668_v12, %v652_v11  ;;  %v683_v48 = vadd.f32 %v667_v29, %v651_v36  ;;  %v697_v42 = vmax.f32 %v681_v52, 0.0  ;;  %v4131_v53 = vld [vmem:[#allocation18_spill] sm:$0xff] }
 0x30b   :  { %2779 = vmatprep.subr.mxu1 %v710_v1  ;;  %v705_v0 = vmax.f32 %v689_v55, 0.0  ;;  %v701_v50 = vmax.f32 %v685_v61, 0.0  ;;  %v682_v9 = vadd.f32 %v666_v58, %v650_v57  ;;  %v4135_v29 = vld [vmem:[#allocation22_spill] sm:$0xff] }
 0x30c   :  { %2780 = vmatpush3.msra.mxu1 %v710_v1  ;;  %v703_v35 = vmax.f32 %v687_v44, 0.0  ;;  %v700_v40 = vmax.f32 %v684_v30, 0.0  ;;  %v699_v13 = vmax.f32 %v683_v48, 0.0 }
 0x30d   :  { %2781 = vmatprep.subr.mxu1 %v709_v5  ;;  %v698_v49 = vmax.f32 %v682_v9, 0.0 }
 0x30e   :  { %2782 = vmatpush3.msra.mxu1 %v709_v5 }
 0x30f   :  { %2783 = vmatprep.subr.mxu1 %v708_v8 }
 0x310   :  { %2784 = vmatpush3.msra.mxu1 %v708_v8 }
 0x311   :  { %2785 = vmatprep.subr.mxu1 %v707_v62 }
 0x312   :  { %2786 = vmatpush3.msra.mxu1 %v707_v62  ;;  %v4132_v62 = vld [vmem:[#allocation19_spill] sm:$0xff] }
 0x313   :  { %2787 = vmatprep.subr.mxu1 %v706_v39 }
 0x314   :  { %2788 = vmatpush3.msra.mxu1 %v706_v39 }
 0x315   :  { %2789 = vmatprep.subr.mxu1 %v705_v0 }
 0x316   :  { %2790 = vmatpush3.msra.mxu1 %v705_v0  ;;  %v4134_v0 = vld [vmem:[#allocation21_spill] sm:$0xff] }
 0x317   :  { %2791 = vmatprep.subr.mxu1 %v704_v31 }
 0x318   :  { %2792 = vmatpush3.msra.mxu1 %v704_v31 }
 0x319   :  { %2793 = vmatprep.subr.mxu1 %v703_v35 }
 0x31a   :  { %2794 = vmatpush3.msra.mxu1 %v703_v35  ;;  %v4136_v35 = vld [vmem:[#allocation23_spill] sm:$0xff] }
 0x31b   :  { %2795 = vmatprep.subr.mxu1 %v702_v60 }
 0x31c   :  { %2796 = vmatpush3.msra.mxu1 %v702_v60 }
 0x31d   :  { %2797 = vmatprep.subr.mxu1 %v701_v50 }
 0x31e   :  { %2798 = vmatpush3.msra.mxu1 %v701_v50  ;;  %v4138_v50 = vld [vmem:[#allocation25_spill] sm:$0xff] }
 0x31f   :  { %2799 = vmatprep.subr.mxu1 %v700_v40 }
 0x320   :  { %2800 = vmatpush3.msra.mxu1 %v700_v40 }
 0x321   :  { %2801 = vmatprep.subr.mxu1 %v699_v13 }
 0x322   :  { %2802 = vmatpush3.msra.mxu1 %v699_v13 }
 0x323   :  { %2803 = vmatprep.subr.mxu1 %v698_v49 }
 0x324   :  { %2804 = vmatpush3.msra.mxu1 %v698_v49  ;;  %v4139_v49 = vld [vmem:[#allocation26_spill] sm:$0xff] }
 0x325   :  { %2805 = vmatprep.subr.mxu1 %v697_v42 }
 0x326   :  { %2806 = vmatpush3.msra.mxu1 %v697_v42 }
 0x327   :  { %2808 = vmatmul.mubr.f32.vlgmr.msra.gmra.mxu1 %v3523_v14  ;;  %v894_v14 = vld [vmem:[#allocation8 + $0x98] sm:$0xff] }
 0x328   :  { %2810 = vmatprep.mubr.f32.mxu1 %v3525_v15  ;;  %2855 = vmatprep.subr.mxu0 %v894_v14  ;;  %v893_v15 = vld [vmem:[#allocation8 + $0x90] sm:$0xff] }
 0x329   :  { %2856 = vmatpush3.msra.mxu0 %v894_v14  ;;  %v4140_v14 = vld [vmem:[#allocation27_spill] sm:$0xff] }
 0x32a   :  { %2857 = vmatprep.subr.mxu0 %v893_v15 }
 0x32b   :  { %2811 = vmatmul.mubr.f32.gmra.mxu1 %v3529_v16  ;;  %2858 = vmatpush3.msra.mxu0 %v893_v15 }
 0x32c   :  { %2813 = vmatprep.mubr.f32.mxu1 %v3531_v17  ;;  %2859 = vmatprep.subr.mxu0 %v892_v41 }
 0x32d   :  { %2860 = vmatpush3.msra.mxu0 %v892_v41 }
 0x32e   :  { %2861 = vmatprep.subr.mxu0 %v891_v59 }
 0x32f   :  { %2814 = vmatmul.mubr.f32.gmra.mxu1 %v3535_v18  ;;  %2862 = vmatpush3.msra.mxu0 %v891_v59 }
 0x330   :  { %2816 = vmatprep.mubr.f32.mxu1 %v3537_v19 }
 0x333   :  { %2817 = vmatmul.mubr.f32.gmra.mxu1 %v3541_v20 }
 0x334   :  { %2819 = vmatprep.mubr.f32.mxu1 %v3543_v21 }
 0x337   :  { %2820 = vmatmul.mubr.f32.gmra.mxu1 %v3547_v22 }
 0x338   :  { %2822 = vmatprep.mubr.f32.mxu1 %v3549_v23 }
 0x33b   :  { %2823 = vmatmul.mubr.f32.gmra.mxu1 %v3553_v24 }
 0x33c   :  { %2825 = vmatprep.mubr.f32.mxu1 %v3555_v25 }
 0x33f   :  { %2826 = vmatmul.mubr.f32.gmra.mxu1 %v3559_v26 }
 0x340   :  { %2828 = vmatprep.mubr.f32.mxu1 %v3561_v27 }
 0x343   :  { %2829 = vmatmul.mubr.f32.gmra.mxu1 %v3565_v28 }
 0x344   :  { %2919 = vmatprep.mubr.f32.mxu1 %v3461_v32  ;;  %v4130_v32 = vld [vmem:[#allocation17_spill] sm:$0xff] }
 0x3e7   :  { %v2809_v56 = vpop.f32.mrf.mxu1 }
 0x3e8   :  { %v859_v46 = vmul.f32 0.9, %v2809_v56 }
 0x3e9   :  { %v779_v1 = vpop.f32.mrf.mxu1 }
 0x3ea   :  { %v858_v3 = vmul.f32 0.9, %v779_v1  ;;  %v3719_v7 = vadd.f32 %v859_v46, %v4130_v32  ;;  %v4141_v1 = vld [vmem:[#allocation28_spill] sm:$0xff] }
 0x3eb   :  { %v2812_v54 = vpop.f32.mrf.mxu1 }
 0x3ec   :  { %v3716_v5 = vadd.f32 %v858_v3, %v4129_v2  ;;  %v861_v6 = vmul.f32 0.9, %v2812_v54  ;;  %v4142_v54 = vld [vmem:[#allocation29_spill] sm:$0xff] }
 0x3ed   :  { %v789_v47 = vpop.f32.mrf.mxu1 }
 0x3ee   :  { %v860_v8 = vmul.f32 0.9, %v789_v47  ;;  %2863 = vmatprep.mubr.f32.mxu0 %v3716_v5  ;;  %v3727_v34 = vadd.f32 %v861_v6, %v4132_v62 }
 0x3ef   :  { %v2815_v45 = vpop.f32.mrf.mxu1  ;;  %2864 = vmatmul.mubr.f32.vlgmr.msra.gmra.mxu0 %v3719_v7 }
 0x3f0   :  { %v3724_v55 = vadd.f32 %v860_v8, %v4131_v53  ;;  %v863_v4 = vmul.f32 0.9, %v2815_v45 }
 0x3f1   :  { %v799_v37 = vpop.f32.mrf.mxu1 }
 0x3f2   :  { %v862_v39 = vmul.f32 0.9, %v799_v37  ;;  %2866 = vmatprep.mubr.f32.mxu0 %v3724_v55  ;;  %v3735_v12 = vadd.f32 %v863_v4, %v4134_v0  ;;  %v4143_v4 = vld [vmem:[#allocation30_spill] sm:$0xff] }
 0x3f3   :  { %v2818_v43 = vpop.f32.mrf.mxu1  ;;  %2867 = vmatmul.mubr.f32.gmra.mxu0 %v3727_v34 }
 0x3f4   :  { %v3732_v44 = vadd.f32 %v862_v39, %v4133_v33  ;;  %v865_v10 = vmul.f32 0.9, %v2818_v43  ;;  %v4144_v39 = vld [vmem:[#allocation31_spill] sm:$0xff] }
 0x3f5   :  { %v809_v63 = vpop.f32.mrf.mxu1 }
 0x3f6   :  { %v864_v31 = vmul.f32 0.9, %v809_v63  ;;  %2869 = vmatprep.mubr.f32.mxu0 %v3732_v44  ;;  %v3743_v58 = vadd.f32 %v865_v10, %v4136_v35  ;;  %v1309_v10 = vld [vmem:[#allocation8 + $0x178] sm:$0xff]  ;;  %v1308_v63 = vld [vmem:[#allocation8 + $0x170] sm:$0xff] }
 0x3f7   :  { %v2821_v11 = vpop.f32.mrf.mxu1  ;;  %2870 = vmatmul.mubr.f32.gmra.mxu0 %v3735_v12  ;;  %2943 = vmatprep.subr.mxu0 %v1309_v10 }
 0x3f8   :  { %v3740_v61 = vadd.f32 %v864_v31, %v4135_v29  ;;  %v867_v30 = vmul.f32 0.9, %v2821_v11  ;;  %2944 = vmatpush3.msra.mxu0 %v1309_v10  ;;  %v1307_v31 = vld [vmem:[#allocation8 + $0x168] sm:$0xff]  ;;  %v1306_v11 = vld [vmem:[#allocation8 + $0x160] sm:$0xff] }
 0x3f9   :  { %v819_v36 = vpop.f32.mrf.mxu1  ;;  %2945 = vmatprep.subr.mxu0 %v1308_v63 }
 0x3fa   :  { %v866_v60 = vmul.f32 0.9, %v819_v36  ;;  %2872 = vmatprep.mubr.f32.mxu0 %v3740_v61  ;;  %v3751_v9 = vadd.f32 %v867_v30, %v4138_v50  ;;  %2946 = vmatpush3.msra.mxu0 %v1308_v63  ;;  %v1305_v30 = vld [vmem:[#allocation8 + $0x158] sm:$0xff]  ;;  %v1304_v36 = vld [vmem:[#allocation8 + $0x150] sm:$0xff] }
 0x3fb   :  { %v2824_v57 = vpop.f32.mrf.mxu1  ;;  %2873 = vmatmul.mubr.f32.gmra.mxu0 %v3743_v58  ;;  %2947 = vmatprep.subr.mxu0 %v1307_v31 }
 0x3fc   :  { %v3748_v48 = vadd.f32 %v866_v60, %v4137_v38  ;;  %v869_v51 = vmul.f32 0.9, %v2824_v57  ;;  %2948 = vmatpush3.msra.mxu0 %v1307_v31  ;;  %v1303_v60 = vld [vmem:[#allocation8 + $0x148] sm:$0xff]  ;;  %v1302_v57 = vld [vmem:[#allocation8 + $0x140] sm:$0xff] }
 0x3fd   :  { %v829_v40 = vpop.f32.mrf.mxu1  ;;  %2949 = vmatprep.subr.mxu0 %v1306_v11 }
 0x3fe   :  { %v868_v52 = vmul.f32 0.9, %v829_v40  ;;  %2875 = vmatprep.mubr.f32.mxu0 %v3748_v48  ;;  %v3759_v15 = vadd.f32 %v869_v51, %v4140_v14  ;;  %2950 = vmatpush3.msra.mxu0 %v1306_v11  ;;  %v1301_v51 = vld [vmem:[#allocation8 + $0x138] sm:$0xff]  ;;  %v1300_v40 = vld [vmem:[#allocation8 + $0x130] sm:$0xff] }
 0x3ff   :  { %v2827_v13 = vpop.f32.mrf.mxu1  ;;  %2876 = vmatmul.mubr.f32.gmra.mxu0 %v3751_v9  ;;  %2951 = vmatprep.subr.mxu0 %v1305_v30 }
 0x400   :  { %v3756_v42 = vadd.f32 %v868_v52, %v4139_v49  ;;  %v871_v41 = vmul.f32 0.9, %v2827_v13  ;;  %2952 = vmatpush3.msra.mxu0 %v1305_v30  ;;  %v1299_v52 = vld [vmem:[#allocation8 + $0x128] sm:$0xff]  ;;  %v1298_v13 = vld [vmem:[#allocation8 + $0x120] sm:$0xff]  ;;  %v1063_v0 = vmul.f32 0.7768564, %v3759_v15 }
 0x401   :  { %v839_v59 = vpop.f32.mrf.mxu1  ;;  %2953 = vmatprep.subr.mxu0 %v1304_v36 }
 0x402   :  { %v870_v56 = vmul.f32 0.9, %v839_v59  ;;  %2878 = vmatprep.mubr.f32.mxu0 %v3756_v42  ;;  %v3767_v6 = vadd.f32 %v871_v41, %v4142_v54  ;;  %2954 = vmatpush3.msra.mxu0 %v1304_v36 }
 0x403   :  { %v2830_v46 = vpop.f32.mrf.mxu1  ;;  %2879 = vmatmul.mubr.f32.gmra.mxu0 %v3759_v15  ;;  %2955 = vmatprep.subr.mxu0 %v1303_v60 }
 0x404   :  { %v3764_v3 = vadd.f32 %v870_v56, %v4141_v1  ;;  %v873_v47 = vmul.f32 0.9, %v2830_v46  ;;  %2956 = vmatpush3.msra.mxu0 %v1303_v60 }
 0x405   :  { %v849_v8 = vpop.f32.mrf.mxu1  ;;  %2957 = vmatprep.subr.mxu0 %v1302_v57 }
 0x406   :  { %v872_v45 = vmul.f32 0.9, %v849_v8  ;;  %2881 = vmatprep.mubr.f32.mxu0 %v3764_v3  ;;  %v889_v43 = vadd.f32 %v873_v47, %v4144_v39  ;;  %2958 = vmatpush3.msra.mxu0 %v1302_v57  ;;  %v1064_v49 = vmul.f32 0.7768564, %v3764_v3  ;;  %v1061_v3 = vmul.f32 0.7768564, %v3751_v9 }
 0x407   :  { %2882 = vmatmul.mubr.f32.gmra.mxu0 %v3767_v6  ;;  %2959 = vmatprep.subr.mxu0 %v1301_v51 }
 0x408   :  { %v888_v37 = vadd.f32 %v872_v45, %v4143_v4  ;;  %2960 = vmatpush3.msra.mxu0 %v1301_v51 }
 0x409   :  { %2961 = vmatprep.subr.mxu0 %v1300_v40 }
 0x40a   :  { %2884 = vmatprep.mubr.f32.mxu0 %v888_v37  ;;  %2962 = vmatpush3.msra.mxu0 %v1300_v40  ;;  %v1067_v40 = vmul.f32 0.7768564, %v889_v43  ;;  %v1066_v1 = vmul.f32 0.7768564, %v888_v37 }
 0x40b   :  { %2885 = vmatmul.mubr.f32.gmra.mxu0 %v889_v43  ;;  %2963 = vmatprep.subr.mxu0 %v1299_v52 }
 0x40c   :  { %2964 = vmatpush3.msra.mxu0 %v1299_v52 }
 0x40d   :  { %2965 = vmatprep.subr.mxu0 %v1298_v13 }
 0x40e   :  { %2966 = vmatpush3.msra.mxu0 %v1298_v13  ;;  %v1065_v13 = vmul.f32 0.7768564, %v3767_v6 }
 0x4af   :  { %v3773_v41 = vpop.f32.mrf.mxu0 }
 0x4b1   :  { %v3775_v59 = vpop.f32.mrf.mxu0 }
 0x4b3   :  { %v3777_v56 = vpop.f32.mrf.mxu0 }
 0x4b5   :  { %v3779_v46 = vpop.f32.mrf.mxu0 }
 0x4b7   :  { %v2871_v47 = vpop.f32.mrf.mxu0 }
 0x4b8   :  { %v1073_v9 = vmul.f32 0.22314355, %v2871_v47  ;;  %v1070_v47 = vmul.f32 0.22314355, %v3779_v46 }
 0x4b9   :  { %v993_v8 = vpop.f32.mrf.mxu0 }
 0x4bb   :  { %v2874_v45 = vpop.f32.mrf.mxu0 }
 0x4bd   :  { %v1003_v10 = vpop.f32.mrf.mxu0 }
 0x4bf   :  { %v2877_v63 = vpop.f32.mrf.mxu0 }
 0x4c0   :  { %v1077_v43 = vmul.f32 0.22314355, %v2877_v63  ;;  %v1056_v63 = vmul.f32 0.7768564, %v3732_v44  ;;  %v1053_v44 = vmul.f32 0.7768564, %v3719_v7 }
 0x4c1   :  { %v1013_v31 = vpop.f32.mrf.mxu0 }
 0x4c2   :  { %v1076_v37 = vmul.f32 0.22314355, %v1013_v31  ;;  %v1093_v15 = vadd.f32 %v1077_v43, %v1061_v3 }
 0x4c3   :  { %v2880_v11 = vpop.f32.mrf.mxu0 }
 0x4c4   :  { %v1079_v50 = vmul.f32 0.22314355, %v2880_v11 }
 0x4c5   :  { %v1023_v30 = vpop.f32.mrf.mxu0 }
 0x4c6   :  { %v1078_v33 = vmul.f32 0.22314355, %v1023_v30  ;;  %v1095_v6 = vadd.f32 %v1079_v50, %v1063_v0  ;;  %v1059_v0 = vmul.f32 0.7768564, %v3743_v58  ;;  %v1071_v58 = vmul.f32 0.22314355, %v3777_v56 }
 0x4c7   :  { %v2883_v36 = vpop.f32.mrf.mxu0 }
 0x4c8   :  { %v1081_v51 = vmul.f32 0.22314355, %v2883_v36 }
 0x4c9   :  { %v1033_v60 = vpop.f32.mrf.mxu0 }
 0x4ca   :  { %v1080_v4 = vmul.f32 0.22314355, %v1033_v60  ;;  %v1097_v38 = vadd.f32 %v1081_v51, %v1065_v13  ;;  %v1062_v60 = vmul.f32 0.7768564, %v3756_v42  ;;  %v1054_v51 = vmul.f32 0.7768564, %v3724_v55 }
 0x4cb   :  { %v2886_v57 = vpop.f32.mrf.mxu0  ;;  %v1052_v13 = vmul.f32 0.7768564, %v3716_v5  ;;  %v3802_v5 = vld [vmem:[#allocation5 + $0x10] sm:$0xff] }
 0x4cc   :  { %v1083_v52 = vmul.f32 0.22314355, %v2886_v57  ;;  %v1096_v62 = vadd.f32 %v1080_v4, %v1064_v49  ;;  %v1113_v57 = vmax.f32 %v1097_v38, 0.0  ;;  %v1111_v49 = vmax.f32 %v1095_v6, 0.0 }
 0x4cd   :  { %v1043_v39 = vpop.f32.mrf.mxu0 }
 0x4ce   :  { %v1099_v54 = vadd.f32 %v1083_v52, %v1067_v40  ;;  %v1082_v14 = vmul.f32 0.22314355, %v1043_v39  ;;  %v1094_v39 = vadd.f32 %v1078_v33, %v1062_v60  ;;  %v1109_v33 = vmax.f32 %v1093_v15, 0.0 }
 0x4cf   :  { %v1068_v40 = vmul.f32 0.22314355, %v3775_v59  ;;  %v1086_v52 = vadd.f32 %v1070_v47, %v1054_v51  ;;  %v3799_v59 = vld [vmem:[#allocation5 + $0x8] sm:$0xff] }
 0x4d0   :  { %v1115_v35 = vmax.f32 %v1099_v54, 0.0  ;;  %v1098_v29 = vadd.f32 %v1082_v14, %v1066_v1  ;;  %v1112_v54 = vmax.f32 %v1096_v62, 0.0  ;;  %v1075_v14 = vmul.f32 0.22314355, %v2874_v45  ;;  %v4151_v47 = vld [vmem:[#allocation25_spill] sm:$0xff] }
 0x4d1   :  { %v1110_v50 = vmax.f32 %v1094_v39, 0.0  ;;  %v1058_v62 = vmul.f32 0.7768564, %v3740_v61  ;;  %v1057_v1 = vmul.f32 0.7768564, %v3735_v12  ;;  %v1102_v43 = vmax.f32 %v1086_v52, 0.0 }
 0x4d2   :  { %v1114_v36 = vmax.f32 %v1098_v29, 0.0  ;;  %2887 = vmatprep.subr.mxu1 %v1115_v35  ;;  %v1060_v29 = vmul.f32 0.7768564, %v3748_v48  ;;  %v1091_v42 = vadd.f32 %v1075_v14, %v1059_v0  ;;  %v1072_v48 = vmul.f32 0.22314355, %v993_v8 }
 0x4d3   :  { %2888 = vmatpush3.msra.mxu1 %v1115_v35  ;;  %v1074_v35 = vmul.f32 0.22314355, %v1003_v10  ;;  %v1089_v10 = vadd.f32 %v1073_v9, %v1057_v1  ;;  %v1055_v61 = vmul.f32 0.7768564, %v3727_v34  ;;  %v1069_v12 = vmul.f32 0.22314355, %v3773_v41 }
 0x4d4   :  { %2889 = vmatprep.subr.mxu1 %v1114_v36  ;;  %v1092_v38 = vadd.f32 %v1076_v37, %v1060_v29  ;;  %v1107_v31 = vmax.f32 %v1091_v42, 0.0  ;;  %v1088_v11 = vadd.f32 %v1072_v48, %v1056_v63  ;;  %v1084_v41 = vadd.f32 %v1068_v40, %v1052_v13  ;;  %v4145_v37 = vld [vmem:[#allocation19_spill] sm:$0xff] }
 0x4d5   :  { %2890 = vmatpush3.msra.mxu1 %v1114_v36  ;;  %v1090_v4 = vadd.f32 %v1074_v35, %v1058_v62  ;;  %v1087_v8 = vadd.f32 %v1071_v58, %v1055_v61  ;;  %v1105_v56 = vmax.f32 %v1089_v10, 0.0  ;;  %v1085_v46 = vadd.f32 %v1069_v12, %v1053_v44  ;;  %v4147_v35 = vld [vmem:[#allocation21_spill] sm:$0xff]  ;;  %v4149_v48 = vld [vmem:[#allocation23_spill] sm:$0xff] }
 0x4d6   :  { %2891 = vmatprep.subr.mxu1 %v1113_v57  ;;  %v1108_v45 = vmax.f32 %v1092_v38, 0.0  ;;  %v1104_v34 = vmax.f32 %v1088_v11, 0.0  ;;  %v1100_v7 = vmax.f32 %v1084_v41, 0.0  ;;  %v4153_v40 = vld [vmem:[#allocation27_spill] sm:$0xff]  ;;  %v4154_v41 = vld [vmem:[#allocation28_spill] sm:$0xff] }
 0x4d7   :  { %2892 = vmatpush3.msra.mxu1 %v1113_v57  ;;  %v1106_v30 = vmax.f32 %v1090_v4, 0.0  ;;  %v1103_v36 = vmax.f32 %v1087_v8, 0.0  ;;  %v1101_v55 = vmax.f32 %v1085_v46, 0.0 }
 0x4d8   :  { %2893 = vmatprep.subr.mxu1 %v1112_v54 }
 0x4d9   :  { %2894 = vmatpush3.msra.mxu1 %v1112_v54 }
 0x4da   :  { %2895 = vmatprep.subr.mxu1 %v1111_v49 }
 0x4db   :  { %2896 = vmatpush3.msra.mxu1 %v1111_v49  ;;  %v4146_v49 = vld [vmem:[#allocation20_spill] sm:$0xff] }
 0x4dc   :  { %2897 = vmatprep.subr.mxu1 %v1110_v50 }
 0x4dd   :  { %2898 = vmatpush3.msra.mxu1 %v1110_v50 }
 0x4de   :  { %2899 = vmatprep.subr.mxu1 %v1109_v33 }
 0x4df   :  { %2900 = vmatpush3.msra.mxu1 %v1109_v33  ;;  %v4148_v33 = vld [vmem:[#allocation22_spill] sm:$0xff] }
 0x4e0   :  { %2901 = vmatprep.subr.mxu1 %v1108_v45 }
 0x4e1   :  { %2902 = vmatpush3.msra.mxu1 %v1108_v45 }
 0x4e2   :  { %2903 = vmatprep.subr.mxu1 %v1107_v31 }
 0x4e3   :  { %2904 = vmatpush3.msra.mxu1 %v1107_v31  ;;  %v4150_v31 = vld [vmem:[#allocation24_spill] sm:$0xff] }
 0x4e4   :  { %2905 = vmatprep.subr.mxu1 %v1106_v30 }
 0x4e5   :  { %2906 = vmatpush3.msra.mxu1 %v1106_v30 }
 0x4e6   :  { %2907 = vmatprep.subr.mxu1 %v1105_v56 }
 0x4e7   :  { %2908 = vmatpush3.msra.mxu1 %v1105_v56  ;;  %v4152_v56 = vld [vmem:[#allocation26_spill] sm:$0xff] }
 0x4e8   :  { %2909 = vmatprep.subr.mxu1 %v1104_v34 }
 0x4e9   :  { %2910 = vmatpush3.msra.mxu1 %v1104_v34 }
 0x4ea   :  { %2911 = vmatprep.subr.mxu1 %v1103_v36 }
 0x4eb   :  { %2912 = vmatpush3.msra.mxu1 %v1103_v36 }
 0x4ec   :  { %2913 = vmatprep.subr.mxu1 %v1102_v43 }
 0x4ed   :  { %2914 = vmatpush3.msra.mxu1 %v1102_v43 }
 0x4ee   :  { %2915 = vmatprep.subr.mxu1 %v1101_v55 }
 0x4ef   :  { %2916 = vmatpush3.msra.mxu1 %v1101_v55  ;;  %v4155_v55 = vld [vmem:[#allocation29_spill] sm:$0xff] }
 0x4f0   :  { %2917 = vmatprep.subr.mxu1 %v1100_v7 }
 0x4f1   :  { %2918 = vmatpush3.msra.mxu1 %v1100_v7 }
 0x4f2   :  { %2920 = vmatmul.mubr.f32.vlgmr.msra.gmra.mxu1 %v3799_v59 }
 0x4f3   :  { %2922 = vmatprep.mubr.f32.mxu1 %v3802_v5 }
 0x4f6   :  { %2923 = vmatmul.mubr.f32.gmra.mxu1 %v3529_v16  ;;  %v3241_v16 = vld [vmem:[#allocation5] sm:$0xff] }
 0x4f7   :  { %2925 = vmatprep.mubr.f32.mxu1 %v3531_v17  ;;  %v1297_v17 = vld [vmem:[#allocation8 + $0x118] sm:$0xff] }
 0x4f8   :  { %2967 = vmatprep.subr.mxu0 %v1297_v17 }
 0x4f9   :  { %2968 = vmatpush3.msra.mxu0 %v1297_v17 }
 0x4fa   :  { %2926 = vmatmul.mubr.f32.gmra.mxu1 %v3535_v18  ;;  %v1296_v18 = vld [vmem:[#allocation8 + $0x110] sm:$0xff] }
 0x4fb   :  { %2928 = vmatprep.mubr.f32.mxu1 %v3537_v19  ;;  %2969 = vmatprep.subr.mxu0 %v1296_v18  ;;  %v1295_v19 = vld [vmem:[#allocation8 + $0x108] sm:$0xff] }
 0x4fc   :  { %2970 = vmatpush3.msra.mxu0 %v1296_v18 }
 0x4fd   :  { %2971 = vmatprep.subr.mxu0 %v1295_v19 }
 0x4fe   :  { %2929 = vmatmul.mubr.f32.gmra.mxu1 %v3541_v20  ;;  %2972 = vmatpush3.msra.mxu0 %v1295_v19  ;;  %v1294_v20 = vld [vmem:[#allocation8 + $0x100] sm:$0xff]  ;;  %v4156_v19 = vld [vmem:[#allocation30_spill] sm:$0xff] }
 0x4ff   :  { %2931 = vmatprep.mubr.f32.mxu1 %v3543_v21  ;;  %2973 = vmatprep.subr.mxu0 %v1294_v20 }
 0x500   :  { %2974 = vmatpush3.msra.mxu0 %v1294_v20 }
 0x502   :  { %2932 = vmatmul.mubr.f32.gmra.mxu1 %v3547_v22 }
 0x503   :  { %2934 = vmatprep.mubr.f32.mxu1 %v3549_v23 }
 0x506   :  { %2935 = vmatmul.mubr.f32.gmra.mxu1 %v3553_v24 }
 0x507   :  { %2937 = vmatprep.mubr.f32.mxu1 %v3555_v25 }
 0x50a   :  { %2938 = vmatmul.mubr.f32.gmra.mxu1 %v3559_v26 }
 0x50b   :  { %2940 = vmatprep.mubr.f32.mxu1 %v3561_v27 }
 0x50e   :  { %2941 = vmatmul.mubr.f32.gmra.mxu1 %v3565_v28 }
 0x50f   :  { %3031 = vmatprep.mubr.f32.mxu1 %v3241_v16 }
 0x5b2   :  { %v2921_v21 = vpop.f32.mrf.mxu1 }
 0x5b3   :  { %v1262_v22 = vmul.f32 0.9, %v2921_v21  ;;  %v4157_v21 = vld [vmem:[#allocation31_spill] sm:$0xff] }
 0x5b4   :  { %v1182_v23 = vpop.f32.mrf.mxu1 }
 0x5b5   :  { %v1261_v24 = vmul.f32 0.9, %v1182_v23  ;;  %v3822_v27 = vadd.f32 %v1262_v22, %v4130_v32  ;;  %v1712_v23 = vld [vmem:[#allocation8 + $0x1f8] sm:$0xff] }
 0x5b6   :  { %v2924_v25 = vpop.f32.mrf.mxu1  ;;  %3055 = vmatprep.subr.mxu0 %v1712_v23 }
 0x5b7   :  { %v3819_v26 = vadd.f32 %v1261_v24, %v4129_v2  ;;  %v1264_v28 = vmul.f32 0.9, %v2924_v25  ;;  %v1711_v24 = vld [vmem:[#allocation8 + $0x1f0] sm:$0xff]  ;;  %v1710_v25 = vld [vmem:[#allocation8 + $0x1e8] sm:$0xff] }
 0x5b8   :  { %v1192_v6 = vpop.f32.mrf.mxu1 }
 0x5b9   :  { %v1263_v60 = vmul.f32 0.9, %v1192_v6  ;;  %2975 = vmatprep.mubr.f32.mxu0 %v3819_v26  ;;  %v3830_v39 = vadd.f32 %v1264_v28, %v4145_v37  ;;  %v1709_v28 = vld [vmem:[#allocation8 + $0x1e0] sm:$0xff]  ;;  %v1708_v6 = vld [vmem:[#allocation8 + $0x1d8] sm:$0xff] }
 0x5ba   :  { %v2927_v57 = vpop.f32.mrf.mxu1  ;;  %2976 = vmatmul.mubr.f32.vlgmr.msra.gmra.mxu0 %v3822_v27 }
 0x5bb   :  { %v3827_v3 = vadd.f32 %v1263_v60, %v4131_v53  ;;  %v1266_v54 = vmul.f32 0.9, %v2927_v57  ;;  %3056 = vmatpush3.msra.mxu0 %v1712_v23  ;;  %v1707_v60 = vld [vmem:[#allocation8 + $0x1d0] sm:$0xff]  ;;  %v1706_v57 = vld [vmem:[#allocation8 + $0x1c8] sm:$0xff] }
 0x5bc   :  { %v1202_v14 = vpop.f32.mrf.mxu1  ;;  %3057 = vmatprep.subr.mxu0 %v1711_v24 }
 0x5bd   :  { %v1265_v15 = vmul.f32 0.9, %v1202_v14  ;;  %2978 = vmatprep.mubr.f32.mxu0 %v3827_v3  ;;  %v3838_v38 = vadd.f32 %v1266_v54, %v4147_v35  ;;  %3058 = vmatpush3.msra.mxu0 %v1711_v24  ;;  %v1705_v54 = vld [vmem:[#allocation8 + $0x1c0] sm:$0xff]  ;;  %v1704_v14 = vld [vmem:[#allocation8 + $0x1b8] sm:$0xff] }
 0x5be   :  { %v2930_v29 = vpop.f32.mrf.mxu1  ;;  %2979 = vmatmul.mubr.f32.gmra.mxu0 %v3830_v39  ;;  %3059 = vmatprep.subr.mxu0 %v1710_v25 }
 0x5bf   :  { %v3835_v0 = vadd.f32 %v1265_v15, %v4146_v49  ;;  %v1268_v50 = vmul.f32 0.9, %v2930_v29  ;;  %3060 = vmatpush3.msra.mxu0 %v1710_v25  ;;  %v1703_v15 = vld [vmem:[#allocation8 + $0x1b0] sm:$0xff]  ;;  %v1702_v29 = vld [vmem:[#allocation8 + $0x1a8] sm:$0xff] }
 0x5c0   :  { %v1212_v9 = vpop.f32.mrf.mxu1  ;;  %3061 = vmatprep.subr.mxu0 %v1709_v28 }
 0x5c1   :  { %v1267_v42 = vmul.f32 0.9, %v1212_v9  ;;  %2981 = vmatprep.mubr.f32.mxu0 %v3835_v0  ;;  %v3846_v4 = vadd.f32 %v1268_v50, %v4149_v48  ;;  %3062 = vmatpush3.msra.mxu0 %v1709_v28  ;;  %v1701_v50 = vld [vmem:[#allocation8 + $0x1a0] sm:$0xff] }
 0x5c2   :  { %v2933_v62 = vpop.f32.mrf.mxu1  ;;  %2982 = vmatmul.mubr.f32.gmra.mxu0 %v3838_v38  ;;  %3063 = vmatprep.subr.mxu0 %v1708_v6 }
 0x5c3   :  { %v3843_v1 = vadd.f32 %v1267_v42, %v4148_v33  ;;  %v1270_v45 = vmul.f32 0.9, %v2933_v62  ;;  %3064 = vmatpush3.msra.mxu0 %v1708_v6 }
 0x5c4   :  { %v1222_v58 = vpop.f32.mrf.mxu1  ;;  %3065 = vmatprep.subr.mxu0 %v1707_v60 }
 0x5c5   :  { %v1269_v10 = vmul.f32 0.9, %v1222_v58  ;;  %2984 = vmatprep.mubr.f32.mxu0 %v3843_v1  ;;  %v3854_v11 = vadd.f32 %v1270_v45, %v4151_v47  ;;  %3066 = vmatpush3.msra.mxu0 %v1707_v60 }
 0x5c6   :  { %v2936_v63 = vpop.f32.mrf.mxu1  ;;  %2985 = vmatmul.mubr.f32.gmra.mxu0 %v3846_v4  ;;  %3067 = vmatprep.subr.mxu0 %v1706_v57 }
 0x5c7   :  { %v3851_v61 = vadd.f32 %v1269_v10, %v4150_v31  ;;  %v1272_v30 = vmul.f32 0.9, %v2936_v63  ;;  %3068 = vmatpush3.msra.mxu0 %v1706_v57 }
 0x5c8   :  { %v1232_v12 = vpop.f32.mrf.mxu1  ;;  %3069 = vmatprep.subr.mxu0 %v1705_v54 }
 0x5c9   :  { %v1271_v8 = vmul.f32 0.9, %v1232_v12  ;;  %2987 = vmatprep.mubr.f32.mxu0 %v3851_v61  ;;  %v3862_v52 = vadd.f32 %v1272_v30, %v4153_v40  ;;  %3070 = vmatpush3.msra.mxu0 %v1705_v54 }
 0x5ca   :  { %v2939_v51 = vpop.f32.mrf.mxu1  ;;  %2988 = vmatmul.mubr.f32.gmra.mxu0 %v3854_v11  ;;  %3071 = vmatprep.subr.mxu0 %v1704_v14 }
 0x5cb   :  { %v3859_v44 = vadd.f32 %v1271_v8, %v4152_v56  ;;  %v1274_v34 = vmul.f32 0.9, %v2939_v51  ;;  %3072 = vmatpush3.msra.mxu0 %v1704_v14 }
 0x5cc   :  { %v1242_v46 = vpop.f32.mrf.mxu1  ;;  %3073 = vmatprep.subr.mxu0 %v1703_v15 }
 0x5cd   :  { %v1273_v13 = vmul.f32 0.9, %v1242_v46  ;;  %2990 = vmatprep.mubr.f32.mxu0 %v3859_v44  ;;  %v3870_v7 = vadd.f32 %v1274_v34, %v4155_v55  ;;  %3074 = vmatpush3.msra.mxu0 %v1703_v15 }
 0x5ce   :  { %v2942_v36 = vpop.f32.mrf.mxu1  ;;  %2991 = vmatmul.mubr.f32.gmra.mxu0 %v3862_v52  ;;  %3075 = vmatprep.subr.mxu0 %v1702_v29 }
 0x5cf   :  { %v3867_v43 = vadd.f32 %v1273_v13, %v4154_v41  ;;  %v1276_v16 = vmul.f32 0.9, %v2942_v36  ;;  %3076 = vmatpush3.msra.mxu0 %v1702_v29  ;;  %v1468_v23 = vmul.f32 0.84584934, %v3870_v7 }
 0x5d0   :  { %v1252_v17 = vpop.f32.mrf.mxu1  ;;  %3077 = vmatprep.subr.mxu0 %v1701_v50 }
 0x5d1   :  { %v1275_v18 = vmul.f32 0.9, %v1252_v17  ;;  %2993 = vmatprep.mubr.f32.mxu0 %v3867_v43  ;;  %v1292_v22 = vadd.f32 %v1276_v16, %v4157_v21  ;;  %3078 = vmatpush3.msra.mxu0 %v1701_v50  ;;  %v1467_v57 = vmul.f32 0.84584934, %v3867_v43  ;;  %v1466_v50 = vmul.f32 0.84584934, %v3862_v52 }
 0x5d2   :  { %2994 = vmatmul.mubr.f32.gmra.mxu0 %v3870_v7  ;;  %v1464_v43 = vmul.f32 0.84584934, %v3854_v11 }
 0x5d3   :  { %v1291_v20 = vadd.f32 %v1275_v18, %v4156_v19  ;;  %v1470_v17 = vmul.f32 0.84584934, %v1292_v22 }
 0x5d5   :  { %2996 = vmatprep.mubr.f32.mxu0 %v1291_v20  ;;  %v1469_v6 = vmul.f32 0.84584934, %v1291_v20 }
 0x5d6   :  { %2997 = vmatmul.mubr.f32.gmra.mxu0 %v1292_v22 }
 0x67a   :  { %v3876_v9 = vpop.f32.mrf.mxu0 }
 0x67c   :  { %v3878_v42 = vpop.f32.mrf.mxu0 }
 0x67e   :  { %v3880_v62 = vpop.f32.mrf.mxu0 }
 0x680   :  { %v3882_v45 = vpop.f32.mrf.mxu0 }
 0x682   :  { %v2983_v58 = vpop.f32.mrf.mxu0 }
 0x683   :  { %v1476_v11 = vmul.f32 0.15415068, %v2983_v58  ;;  %v1473_v58 = vmul.f32 0.15415068, %v3882_v45 }
 0x684   :  { %v1396_v10 = vpop.f32.mrf.mxu0 }
 0x686   :  { %v2986_v63 = vpop.f32.mrf.mxu0 }
 0x687   :  { %v1478_v52 = vmul.f32 0.15415068, %v2986_v63  ;;  %v1460_v63 = vmul.f32 0.84584934, %v3838_v38  ;;  %v1472_v38 = vmul.f32 0.15415068, %v3876_v9 }
 0x688   :  { %v1406_v30 = vpop.f32.mrf.mxu0 }
 0x68a   :  { %v2989_v12 = vpop.f32.mrf.mxu0 }
 0x68b   :  { %v1480_v22 = vmul.f32 0.15415068, %v2989_v12  ;;  %v1462_v12 = vmul.f32 0.84584934, %v3846_v4  ;;  %v1474_v4 = vmul.f32 0.15415068, %v3880_v62 }
 0x68c   :  { %v1416_v8 = vpop.f32.mrf.mxu0 }
 0x68d   :  { %v1479_v20 = vmul.f32 0.15415068, %v1416_v8  ;;  %v1494_v8 = vadd.f32 %v1478_v52, %v1462_v12  ;;  %v3253_v52 = vld [vmem:[#allocation5 + $0x70] sm:$0xff]  ;;  %v1698_v12 = vld [vmem:[#allocation8 + $0x188] sm:$0xff] }
 0x68e   :  { %v2992_v51 = vpop.f32.mrf.mxu0 }
 0x68f   :  { %v1482_v54 = vmul.f32 0.15415068, %v2992_v51 }
 0x690   :  { %v1426_v34 = vpop.f32.mrf.mxu0 }
 0x691   :  { %v1481_v21 = vmul.f32 0.15415068, %v1426_v34  ;;  %v1498_v7 = vadd.f32 %v1482_v54, %v1466_v50  ;;  %v1496_v34 = vadd.f32 %v1480_v22, %v1464_v43  ;;  %v1455_v50 = vmul.f32 0.84584934, %v3819_v26  ;;  %v3242_v26 = vld [vmem:[#allocation5 + $0x18] sm:$0xff]  ;;  %v3247_v43 = vld [vmem:[#allocation5 + $0x40] sm:$0xff] }
 0x692   :  { %v2995_v46 = vpop.f32.mrf.mxu0 }
 0x693   :  { %v1484_v16 = vmul.f32 0.15415068, %v2995_v46 }
 0x694   :  { %v1436_v13 = vpop.f32.mrf.mxu0 }
 0x695   :  { %v1483_v25 = vmul.f32 0.15415068, %v1436_v13  ;;  %v1500_v14 = vadd.f32 %v1484_v16, %v1468_v23  ;;  %v1465_v13 = vmul.f32 0.84584934, %v3859_v44  ;;  %v1477_v44 = vmul.f32 0.15415068, %v1406_v30 }
 0x696   :  { %v2998_v36 = vpop.f32.mrf.mxu0  ;;  %v1492_v30 = vadd.f32 %v1476_v11, %v1460_v63  ;;  %v1935_v11 = vld [vmem:[#allocation10 + $0x68] sm:$0xff] }
 0x697   :  { %v1486_v18 = vmul.f32 0.15415068, %v2998_v36  ;;  %v1499_v19 = vadd.f32 %v1483_v25, %v1467_v57  ;;  %v1516_v36 = vmax.f32 %v1500_v14, 0.0  ;;  %v1497_v51 = vadd.f32 %v1481_v21, %v1465_v13  ;;  %v3245_v13 = vld [vmem:[#allocation5 + $0x30] sm:$0xff]  ;;  %v1931_v63 = vld [vmem:[#allocation10 + $0x48] sm:$0xff] }
 0x698   :  { %v1446_v24 = vpop.f32.mrf.mxu0  ;;  %v1512_v21 = vmax.f32 %v1496_v34, 0.0  ;;  %v1457_v14 = vmul.f32 0.84584934, %v3827_v3  ;;  %v1508_v62 = vmax.f32 %v1492_v30, 0.0  ;;  %v3254_v34 = vld [vmem:[#allocation5 + $0x78] sm:$0xff] }
 0x699   :  { %v1502_v28 = vadd.f32 %v1486_v18, %v1470_v17  ;;  %v1485_v60 = vmul.f32 0.15415068, %v1446_v24  ;;  %v1515_v16 = vmax.f32 %v1499_v19, 0.0  ;;  %v1463_v17 = vmul.f32 0.84584934, %v3851_v61 }
 0x69a   :  { %v1514_v18 = vmax.f32 %v1498_v7, 0.0  ;;  %v1513_v24 = vmax.f32 %v1497_v51, 0.0  ;;  %v1461_v19 = vmul.f32 0.84584934, %v3843_v1  ;;  %v1475_v61 = vmul.f32 0.15415068, %v1396_v10 }
 0x69b   :  { %v1518_v15 = vmax.f32 %v1502_v28, 0.0  ;;  %v1501_v29 = vadd.f32 %v1485_v60, %v1469_v6  ;;  %v1495_v23 = vadd.f32 %v1479_v20, %v1463_v17  ;;  %v1459_v6 = vmul.f32 0.84584934, %v3835_v0  ;;  %v3244_v7 = vld [vmem:[#allocation5 + $0x28] sm:$0xff]  ;;  %v3249_v51 = vld [vmem:[#allocation5 + $0x50] sm:$0xff]  ;;  %v1700_v17 = vld [vmem:[#allocation8 + $0x198] sm:$0xff] }
 0x69c   :  { %v1493_v25 = vadd.f32 %v1477_v44, %v1461_v19  ;;  %v1510_v60 = vmax.f32 %v1494_v8, 0.0  ;;  %v1458_v1 = vmul.f32 0.84584934, %v3830_v39  ;;  %v1456_v0 = vmul.f32 0.84584934, %v3822_v27  ;;  %v3248_v20 = vld [vmem:[#allocation5 + $0x48] sm:$0xff]  ;;  %3079 = vmatprep.subr.mxu0 %v1700_v17 }
 0x69d   :  { %v1517_v46 = vmax.f32 %v1501_v29, 0.0  ;;  %2999 = vmatprep.subr.mxu1 %v1518_v15  ;;  %v1511_v28 = vmax.f32 %v1495_v23, 0.0  ;;  %v1491_v57 = vadd.f32 %v1475_v61, %v1459_v6  ;;  %v1489_v29 = vadd.f32 %v1473_v58, %v1457_v14  ;;  %3080 = vmatpush3.msra.mxu0 %v1700_v17  ;;  %v1697_v44 = vld [vmem:[#allocation8 + $0x180] sm:$0xff]  ;;  %v1937_v23 = vld [vmem:[#allocation10 + $0x78] sm:$0xff] }
 0x69e   :  { %3000 = vmatpush3.msra.mxu1 %v1518_v15  ;;  %v1509_v54 = vmax.f32 %v1493_v25, 0.0  ;;  %v1490_v10 = vadd.f32 %v1474_v4, %v1458_v1  ;;  %v1471_v15 = vmul.f32 0.15415068, %v3878_v42  ;;  %v1488_v45 = vadd.f32 %v1472_v38, %v1456_v0  ;;  %v3243_v42 = vld [vmem:[#allocation5 + $0x20] sm:$0xff]  ;;  %v1933_v19 = vld [vmem:[#allocation10 + $0x58] sm:$0xff]  ;;  %v1927_v4 = vld [vmem:[#allocation10 + $0x28] sm:$0xff] }
 0x69f   :  { %3001 = vmatprep.subr.mxu1 %v1517_v46  ;;  %v1507_v39 = vmax.f32 %v1491_v57, 0.0  ;;  %v1505_v22 = vmax.f32 %v1489_v29, 0.0  ;;  %v1934_v8 = vld [vmem:[#allocation10 + $0x60] sm:$0xff]  ;;  %v1929_v25 = vld [vmem:[#allocation10 + $0x38] sm:$0xff] }
 0x6a0   :  { %3002 = vmatpush3.msra.mxu1 %v1517_v46  ;;  %v1506_v46 = vmax.f32 %v1490_v10, 0.0  ;;  %v1487_v9 = vadd.f32 %v1471_v15, %v1455_v50  ;;  %v1504_v3 = vmax.f32 %v1488_v45, 0.0  ;;  %v1930_v61 = vld [vmem:[#allocation10 + $0x40] sm:$0xff] }
 0x6a1   :  { %3003 = vmatprep.subr.mxu1 %v1516_v36 }
 0x6a2   :  { %3004 = vmatpush3.msra.mxu1 %v1516_v36  ;;  %v1503_v27 = vmax.f32 %v1487_v9, 0.0  ;;  %v3246_v36 = vld [vmem:[#allocation5 + $0x38] sm:$0xff] }
 0x6a3   :  { %3005 = vmatprep.subr.mxu1 %v1515_v16 }
 0x6a4   :  { %3006 = vmatpush3.msra.mxu1 %v1515_v16  ;;  %v3250_v16 = vld [vmem:[#allocation5 + $0x58] sm:$0xff] }
 0x6a5   :  { %3007 = vmatprep.subr.mxu1 %v1514_v18 }
 0x6a6   :  { %3008 = vmatpush3.msra.mxu1 %v1514_v18  ;;  %v1699_v18 = vld [vmem:[#allocation8 + $0x190] sm:$0xff] }
 0x6a7   :  { %3009 = vmatprep.subr.mxu1 %v1513_v24  ;;  %3081 = vmatprep.subr.mxu0 %v1699_v18 }
 0x6a8   :  { %3010 = vmatpush3.msra.mxu1 %v1513_v24  ;;  %3082 = vmatpush3.msra.mxu0 %v1699_v18  ;;  %v1936_v24 = vld [vmem:[#allocation10 + $0x70] sm:$0xff]  ;;  %v4159_v18 = vld [vmem:[#allocation31_spill] sm:$0xff] }
 0x6a9   :  { %3011 = vmatprep.subr.mxu1 %v1512_v21  ;;  %3083 = vmatprep.subr.mxu0 %v1698_v12 }
 0x6aa   :  { %3012 = vmatpush3.msra.mxu1 %v1512_v21  ;;  %3084 = vmatpush3.msra.mxu0 %v1698_v12  ;;  %v1932_v21 = vld [vmem:[#allocation10 + $0x50] sm:$0xff] }
 0x6ab   :  { %3013 = vmatprep.subr.mxu1 %v1511_v28  ;;  %3085 = vmatprep.subr.mxu0 %v1697_v44 }
 0x6ac   :  { %3014 = vmatpush3.msra.mxu1 %v1511_v28  ;;  %3086 = vmatpush3.msra.mxu0 %v1697_v44  ;;  %v1928_v28 = vld [vmem:[#allocation10 + $0x30] sm:$0xff] }
 0x6ad   :  { %3015 = vmatprep.subr.mxu1 %v1510_v60  ;;  %v1924_v44 = vld [vmem:[#allocation10 + $0x10] sm:$0xff] }
 0x6ae   :  { %3016 = vmatpush3.msra.mxu1 %v1510_v60 }
 0x6af   :  { %3017 = vmatprep.subr.mxu1 %v1509_v54 }
 0x6b0   :  { %3018 = vmatpush3.msra.mxu1 %v1509_v54 }
 0x6b1   :  { %3019 = vmatprep.subr.mxu1 %v1508_v62 }
 0x6b2   :  { %3020 = vmatpush3.msra.mxu1 %v1508_v62 }
 0x6b3   :  { %3021 = vmatprep.subr.mxu1 %v1507_v39 }
 0x6b4   :  { %3022 = vmatpush3.msra.mxu1 %v1507_v39 }
 0x6b5   :  { %3023 = vmatprep.subr.mxu1 %v1506_v46 }
 0x6b6   :  { %3024 = vmatpush3.msra.mxu1 %v1506_v46 }
 0x6b7   :  { %3025 = vmatprep.subr.mxu1 %v1505_v22 }
 0x6b8   :  { %3026 = vmatpush3.msra.mxu1 %v1505_v22 }
 0x6b9   :  { %3027 = vmatprep.subr.mxu1 %v1504_v3 }
 0x6ba   :  { %3028 = vmatpush3.msra.mxu1 %v1504_v3 }
 0x6bb   :  { %3029 = vmatprep.subr.mxu1 %v1503_v27 }
 0x6bc   :  { %3030 = vmatpush3.msra.mxu1 %v1503_v27 }
 0x6bd   :  { %3032 = vmatmul.mubr.f32.vlgmr.msra.gmra.mxu1 %v3799_v59  ;;  %v3251_v59 = vld [vmem:[#allocation5 + $0x60] sm:$0xff]  ;;  %3111 = vmatprep.subr.mxu1 %v1937_v23 }
 0x6be   :  { %3034 = vmatprep.mubr.f32.mxu1 %v3802_v5  ;;  %v3252_v5 = vld [vmem:[#allocation5 + $0x68] sm:$0xff]  ;;  %3112 = vmatpush3.msra.mxu1 %v1937_v23 }
 0x6bf   :  { %3113 = vmatprep.subr.mxu1 %v1936_v24  ;;  %v1923_v23 = vld [vmem:[#allocation10 + $0x8] sm:$0xff] }
 0x6c0   :  { %3114 = vmatpush3.msra.mxu1 %v1936_v24  ;;  %v1922_v24 = vld [vmem:[#allocation10] sm:$0xff] }
 0x6c1   :  { %3035 = vmatmul.mubr.f32.gmra.mxu1 %v3242_v26  ;;  %3115 = vmatprep.subr.mxu1 %v1935_v11 }
 0x6c2   :  { %3037 = vmatprep.mubr.f32.mxu1 %v3243_v42  ;;  %3116 = vmatpush3.msra.mxu1 %v1935_v11 }
 0x6c3   :  { %3117 = vmatprep.subr.mxu1 %v1934_v8 }
 0x6c4   :  { %3118 = vmatpush3.msra.mxu1 %v1934_v8 }
 0x6c5   :  { %3038 = vmatmul.mubr.f32.gmra.mxu1 %v3244_v7  ;;  %3119 = vmatprep.subr.mxu1 %v1933_v19 }
 0x6c6   :  { %3040 = vmatprep.mubr.f32.mxu1 %v3245_v13  ;;  %3120 = vmatpush3.msra.mxu1 %v1933_v19 }
 0x6c7   :  { %3121 = vmatprep.subr.mxu1 %v1932_v21 }
 0x6c8   :  { %3122 = vmatpush3.msra.mxu1 %v1932_v21 }
 0x6c9   :  { %3041 = vmatmul.mubr.f32.gmra.mxu1 %v3246_v36  ;;  %3123 = vmatprep.subr.mxu1 %v1931_v63 }
 0x6ca   :  { %3043 = vmatprep.mubr.f32.mxu1 %v3247_v43  ;;  %3124 = vmatpush3.msra.mxu1 %v1931_v63 }
 0x6cb   :  { %3125 = vmatprep.subr.mxu1 %v1930_v61 }
 0x6cc   :  { %3126 = vmatpush3.msra.mxu1 %v1930_v61 }
 0x6cd   :  { %3044 = vmatmul.mubr.f32.gmra.mxu1 %v3248_v20  ;;  %3127 = vmatprep.subr.mxu1 %v1929_v25 }
 0x6ce   :  { %3046 = vmatprep.mubr.f32.mxu1 %v3249_v51  ;;  %3128 = vmatpush3.msra.mxu1 %v1929_v25 }
 0x6cf   :  { %3129 = vmatprep.subr.mxu1 %v1928_v28 }
 0x6d0   :  { %3130 = vmatpush3.msra.mxu1 %v1928_v28 }
 0x6d1   :  { %3047 = vmatmul.mubr.f32.gmra.mxu1 %v3250_v16  ;;  %3131 = vmatprep.subr.mxu1 %v1927_v4 }
 0x6d2   :  { %3049 = vmatprep.mubr.f32.mxu1 %v3251_v59  ;;  %3132 = vmatpush3.msra.mxu1 %v1927_v4 }
 0x6d5   :  { %3050 = vmatmul.mubr.f32.gmra.mxu1 %v3252_v5 }
 0x6d6   :  { %3052 = vmatprep.mubr.f32.mxu1 %v3253_v52 }
 0x6d9   :  { %3053 = vmatmul.mubr.f32.gmra.mxu1 %v3254_v34 }
 0x77d   :  { %v3033_v30 = vpop.f32.mrf.mxu1 }
 0x77e   :  { %v1665_v6 = vmul.f32 0.9, %v3033_v30 }
 0x77f   :  { %v1585_v60 = vpop.f32.mrf.mxu1 }
 0x780   :  { %v1664_v1 = vmul.f32 0.9, %v1585_v60  ;;  %v3908_v54 = vadd.f32 %v1665_v6, %v4130_v32 }
 0x781   :  { %v3036_v58 = vpop.f32.mrf.mxu1 }
 0x782   :  { %v3905_v57 = vadd.f32 %v1664_v1, %v4129_v2  ;;  %v1667_v38 = vmul.f32 0.9, %v3036_v58  ;;  %v1859_v19 = vmul.f32 0.882217, %v3908_v54 }
 0x783   :  { %v1595_v10 = vpop.f32.mrf.mxu1 }
 0x784   :  { %v1666_v14 = vmul.f32 0.9, %v1595_v10  ;;  %3087 = vmatprep.mubr.f32.mxu0 %v3905_v57  ;;  %v3916_v15 = vadd.f32 %v1667_v38, %v4145_v37  ;;  %v1858_v63 = vmul.f32 0.882217, %v3905_v57 }
 0x785   :  { %v3039_v62 = vpop.f32.mrf.mxu1  ;;  %3088 = vmatmul.mubr.f32.vlgmr.msra.gmra.mxu0 %v3908_v54 }
 0x786   :  { %v3913_v0 = vadd.f32 %v1666_v14, %v4131_v53  ;;  %v1669_v29 = vmul.f32 0.9, %v3039_v62  ;;  %v1861_v6 = vmul.f32 0.882217, %v3916_v15 }
 0x787   :  { %v1605_v2 = vpop.f32.mrf.mxu1 }
 0x788   :  { %v1668_v39 = vmul.f32 0.9, %v1605_v2  ;;  %3090 = vmatprep.mubr.f32.mxu0 %v3913_v0  ;;  %v3924_v50 = vadd.f32 %v1669_v29, %v4147_v35  ;;  %v1860_v58 = vmul.f32 0.882217, %v3913_v0 }
 0x789   :  { %v3042_v32 = vpop.f32.mrf.mxu1  ;;  %3091 = vmatmul.mubr.f32.gmra.mxu0 %v3916_v15 }
 0x78a   :  { %v3921_v45 = vadd.f32 %v1668_v39, %v4146_v49  ;;  %v1671_v46 = vmul.f32 0.9, %v3042_v32  ;;  %v1863_v57 = vmul.f32 0.882217, %v3924_v50 }
 0x78b   :  { %v1615_v53 = vpop.f32.mrf.mxu1 }
 0x78c   :  { %v1670_v9 = vmul.f32 0.9, %v1615_v53  ;;  %3093 = vmatprep.mubr.f32.mxu0 %v3921_v45  ;;  %v3932_v3 = vadd.f32 %v1671_v46, %v4149_v48  ;;  %v1862_v32 = vmul.f32 0.882217, %v3921_v45 }
 0x78d   :  { %v3045_v37 = vpop.f32.mrf.mxu1  ;;  %3094 = vmatmul.mubr.f32.gmra.mxu0 %v3924_v50 }
 0x78e   :  { %v3929_v22 = vadd.f32 %v1670_v9, %v4148_v33  ;;  %v1673_v27 = vmul.f32 0.9, %v3045_v37 }
 0x78f   :  { %v1625_v49 = vpop.f32.mrf.mxu1 }
 0x790   :  { %v1672_v26 = vmul.f32 0.9, %v1625_v49  ;;  %3096 = vmatprep.mubr.f32.mxu0 %v3929_v22  ;;  %v3940_v7 = vadd.f32 %v1673_v27, %v4151_v47  ;;  %v1865_v27 = vmul.f32 0.882217, %v3932_v3 }
 0x791   :  { %v3048_v35 = vpop.f32.mrf.mxu1  ;;  %3097 = vmatmul.mubr.f32.gmra.mxu0 %v3932_v3 }
 0x792   :  { %v3937_v42 = vadd.f32 %v1672_v26, %v4150_v31  ;;  %v1675_v13 = vmul.f32 0.9, %v3048_v35  ;;  %v1864_v35 = vmul.f32 0.882217, %v3929_v22 }
 0x793   :  { %v1635_v33 = vpop.f32.mrf.mxu1 }
 0x794   :  { %v1674_v36 = vmul.f32 0.9, %v1635_v33  ;;  %3099 = vmatprep.mubr.f32.mxu0 %v3937_v42  ;;  %v3948_v20 = vadd.f32 %v1675_v13, %v4153_v40  ;;  %v4158_v40 = vld [vmem:[#allocation30_spill] sm:$0xff] }
 0x795   :  { %v3051_v48 = vpop.f32.mrf.mxu1  ;;  %3100 = vmatmul.mubr.f32.gmra.mxu0 %v3940_v7 }
 0x796   :  { %v3945_v43 = vadd.f32 %v1674_v36, %v4152_v56  ;;  %v1677_v51 = vmul.f32 0.9, %v3051_v48 }
 0x797   :  { %v1645_v31 = vpop.f32.mrf.mxu1 }
 0x798   :  { %v1676_v16 = vmul.f32 0.9, %v1645_v31  ;;  %3102 = vmatprep.mubr.f32.mxu0 %v3945_v43  ;;  %v3956_v5 = vadd.f32 %v1677_v51, %v4155_v55  ;;  %v1925_v55 = vld [vmem:[#allocation10 + $0x18] sm:$0xff]  ;;  %v1867_v51 = vmul.f32 0.882217, %v3940_v7 }
 0x799   :  { %v3054_v47 = vpop.f32.mrf.mxu1  ;;  %3103 = vmatmul.mubr.f32.gmra.mxu0 %v3948_v20 }
 0x79a   :  { %v3953_v59 = vadd.f32 %v1676_v16, %v4154_v41  ;;  %v1679_v52 = vmul.f32 0.9, %v3054_v47  ;;  %v1926_v41 = vld [vmem:[#allocation10 + $0x20] sm:$0xff]  ;;  %v1866_v47 = vmul.f32 0.882217, %v3937_v42 }
 0x79b   :  { %v1655_v56 = vpop.f32.mrf.mxu1  ;;  %3133 = vmatprep.subr.mxu1 %v1926_v41 }
 0x79c   :  { %v1678_v34 = vmul.f32 0.9, %v1655_v56  ;;  %3105 = vmatprep.mubr.f32.mxu0 %v3953_v59  ;;  %v3964_v12 = vadd.f32 %v1679_v52, %v4159_v18  ;;  %3134 = vmatpush3.msra.mxu1 %v1926_v41  ;;  %v1869_v18 = vmul.f32 0.882217, %v3948_v20 }
 0x79d   :  { %3106 = vmatmul.mubr.f32.gmra.mxu0 %v3956_v5  ;;  %3135 = vmatprep.subr.mxu1 %v1925_v55 }
 0x79e   :  { %v3961_v17 = vadd.f32 %v1678_v34, %v4158_v40  ;;  %3136 = vmatpush3.msra.mxu1 %v1925_v55 }
 0x79f   :  { %3137 = vmatprep.subr.mxu1 %v1924_v44 }
 0x7a0   :  { %3108 = vmatprep.mubr.f32.mxu0 %v3961_v17  ;;  %3138 = vmatpush3.msra.mxu1 %v1924_v44  ;;  %v1868_v44 = vmul.f32 0.882217, %v3945_v43 }
 0x7a1   :  { %3109 = vmatmul.mubr.f32.gmra.mxu0 %v3964_v12  ;;  %3139 = vmatprep.subr.mxu1 %v1923_v23 }
 0x7a2   :  { %3140 = vmatpush3.msra.mxu1 %v1923_v23 }
 0x7a3   :  { %3141 = vmatprep.subr.mxu1 %v1922_v24 }
 0x7a4   :  { %3142 = vmatpush3.msra.mxu1 %v1922_v24 }
 0x845   :  { %v3089_v11 = vpop.f32.mrf.mxu0 }
 0x846   :  { %v1875_v8 = vmul.f32 0.11778303, %v3089_v11 }
 0x847   :  { %v1779_v21 = vpop.f32.mrf.mxu0 }
 0x848   :  { %v1874_v61 = vmul.f32 0.11778303, %v1779_v21  ;;  %v1891_v25 = vadd.f32 %v1875_v8, %v1859_v19  ;;  %v1871_v19 = vmul.f32 0.882217, %v3956_v5 }
 0x849   :  { %v3092_v28 = vpop.f32.mrf.mxu0 }
 0x84a   :  { %v1890_v4 = vadd.f32 %v1874_v61, %v1858_v63  ;;  %v1877_v30 = vmul.f32 0.11778303, %v3092_v28  ;;  %v1907_v10 = vmax.f32 %v1891_v25, 0.0  ;;  %v1870_v61 = vmul.f32 0.882217, %v3953_v59 }
 0x84b   :  { %v1789_v60 = vpop.f32.mrf.mxu0 }
 0x84c   :  { %v1906_v1 = vmax.f32 %v1890_v4, 0.0  ;;  %v1876_v38 = vmul.f32 0.11778303, %v1789_v60  ;;  %v1893_v14 = vadd.f32 %v1877_v30, %v1861_v6  ;;  %v1873_v6 = vmul.f32 0.882217, %v3964_v12 }
 0x84d   :  { %v3095_v62 = vpop.f32.mrf.mxu0 }
 0x84e   :  { %v1892_v29 = vadd.f32 %v1876_v38, %v1860_v58  ;;  %v1879_v54 = vmul.f32 0.11778303, %v3095_v62  ;;  %3143 = vmatprep.mubr.f32.mxu1 %v1906_v1  ;;  %v1909_v15 = vmax.f32 %v1893_v14, 0.0  ;;  %v1872_v58 = vmul.f32 0.882217, %v3961_v17 }
 0x84f   :  { %v1799_v2 = vpop.f32.mrf.mxu0  ;;  %3144 = vmatmul.mubr.f32.vlgmr.msra.gmra.mxu1 %v1907_v10 }
 0x850   :  { %v1908_v39 = vmax.f32 %v1892_v29, 0.0  ;;  %v1878_v46 = vmul.f32 0.11778303, %v1799_v2  ;;  %v1895_v53 = vadd.f32 %v1879_v54, %v1863_v57  ;;  %v2286_v29 = vld [vmem:[%s4079_s6] ss:$0 sm:$0xff]  ;;  %s3390_s6 = smov [#allocation11]  }
 0x851   :  { %v3098_v9 = vpop.f32.mrf.mxu0  ;;  %s2271_s26 = sshll.u32 %s3390_s6, 4  ;;  %s2272_s26 = int_to_ptr.vmem [resolvable:$true] %s2271_s26 }
 0x852   :  { %v1894_v37 = vadd.f32 %v1878_v46, %v1862_v32  ;;  %v1881_v0 = vmul.f32 0.11778303, %v3098_v9  ;;  %3146 = vmatprep.mubr.f32.mxu1 %v1908_v39  ;;  %v1911_v13 = vmax.f32 %v1895_v53, 0.0  ;;  %s3355_s27 = scalar_lea.vmem %s2272_s26, 2048  ;;  %p3360_p12 = scmp.lt.s32.totalorder %s2272_s26, %s2272_s26 }
 0x853   :  { %v1809_v49 = vpop.f32.mrf.mxu0  ;;  %3147 = vmatmul.mubr.f32.gmra.mxu1 %v1909_v15  ;;  %p3356_p11 = scmp.ne.s32.totalorder %s2272_s26, %s3355_s27  ;;  %p3361_p13 = scmp.lt.s32.totalorder %s3355_s27, %s3355_s27 }
 0x854   :  { %v1910_v26 = vmax.f32 %v1894_v37, 0.0  ;;  %v1880_v50 = vmul.f32 0.11778303, %v1809_v49  ;;  %v1897_v33 = vadd.f32 %v1881_v0, %v1865_v27 }
 0x855   :  { %v3101_v36 = vpop.f32.mrf.mxu0  ;;  %p3362_p0 = por %p3361_p13, %p3360_p12 }
 0x856   :  { %v1896_v48 = vadd.f32 %v1880_v50, %v1864_v35  ;;  %v1883_v45 = vmul.f32 0.11778303, %v3101_v36  ;;  %3149 = vmatprep.mubr.f32.mxu1 %v1910_v26  ;;  %v1913_v52 = vmax.f32 %v1897_v33, 0.0 }
 0x857   :  { %v1819_v31 = vpop.f32.mrf.mxu0  ;;  %3150 = vmatmul.mubr.f32.gmra.mxu1 %v1911_v13  ;;  %p3363_p1 = pnand %p3362_p0, %p3356_p11 }
 0x858   :  { %v1912_v16 = vmax.f32 %v1896_v48, 0.0  ;;  %v1882_v3 = vmul.f32 0.11778303, %v1819_v31  ;;  %v1899_v56 = vadd.f32 %v1883_v45, %v1867_v51 }
 0x859   :  { %v3104_v34 = vpop.f32.mrf.mxu0 }
 0x85a   :  { %v1898_v40 = vadd.f32 %v1882_v3, %v1866_v47  ;;  %v1885_v22 = vmul.f32 0.11778303, %v3104_v34  ;;  %3152 = vmatprep.mubr.f32.mxu1 %v1912_v16  ;;  %v1915_v23 = vmax.f32 %v1899_v56, 0.0 }
 0x85b   :  { %v1829_v41 = vpop.f32.mrf.mxu0  ;;  %3153 = vmatmul.mubr.f32.gmra.mxu1 %v1913_v52 }
 0x85c   :  { %v1914_v55 = vmax.f32 %v1898_v40, 0.0  ;;  %v1884_v7 = vmul.f32 0.11778303, %v1829_v41  ;;  %v1901_v24 = vadd.f32 %v1885_v22, %v1869_v18 }
 0x85d   :  { %v3107_v11 = vpop.f32.mrf.mxu0 }
 0x85e   :  { %v1900_v8 = vadd.f32 %v1884_v7, %v1868_v44  ;;  %v1887_v42 = vmul.f32 0.11778303, %v3107_v11  ;;  %3155 = vmatprep.mubr.f32.mxu1 %v1914_v55  ;;  %v1917_v25 = vmax.f32 %v1901_v24, 0.0 }
 0x85f   :  { %v1839_v21 = vpop.f32.mrf.mxu0  ;;  %3156 = vmatmul.mubr.f32.gmra.mxu1 %v1915_v23 }
 0x860   :  { %v1916_v63 = vmax.f32 %v1900_v8, 0.0  ;;  %v1886_v20 = vmul.f32 0.11778303, %v1839_v21  ;;  %v1903_v28 = vadd.f32 %v1887_v42, %v1871_v19 }
 0x861   :  { %v3110_v4 = vpop.f32.mrf.mxu0 }
 0x862   :  { %v1902_v30 = vadd.f32 %v1886_v20, %v1870_v61  ;;  %v1889_v43 = vmul.f32 0.11778303, %v3110_v4  ;;  %3158 = vmatprep.mubr.f32.mxu1 %v1916_v63  ;;  %v1919_v38 = vmax.f32 %v1903_v28, 0.0 }
 0x863   :  { %v1849_v60 = vpop.f32.mrf.mxu0  ;;  %3159 = vmatmul.mubr.f32.gmra.mxu1 %v1917_v25 }
 0x864   :  { %v1918_v1 = vmax.f32 %v1902_v30, 0.0  ;;  %v1888_v5 = vmul.f32 0.11778303, %v1849_v60  ;;  %v1905_v10 = vadd.f32 %v1889_v43, %v1873_v6 }
 0x866   :  { %v1904_v14 = vadd.f32 %v1888_v5, %v1872_v58  ;;  %3161 = vmatprep.mubr.f32.mxu1 %v1918_v1  ;;  %v1921_v62 = vmax.f32 %v1905_v10, 0.0 }
 0x867   :  { %3162 = vmatmul.mubr.f32.gmra.mxu1 %v1919_v38 }
 0x868   :  { %v1920_v59 = vmax.f32 %v1904_v14, 0.0 }
 0x86a   :  { %3164 = vmatprep.mubr.f32.mxu1 %v1920_v59 }
 0x86b   :  { %3165 = vmatmul.mubr.f32.gmra.mxu1 %v1921_v62 }
 0x90f   :  { %v3145_v12 = vpop.f32.mrf.mxu1 }
 0x910   :  { %v2017_v54 = vadd.f32 %v3145_v12, %v2286_v29 }
 0x911   :  { %v2011_v57 = vpop.f32.mrf.mxu1 }
 0x912   :  { %2092 = vmax.xlane.f32.xlu0 %v2017_v54  ;;  %v2012_v17 = vadd.f32 %v2286_v29, %v2011_v57 }
 0x913   :  { %v3148_v2 = vpop.f32.mrf.mxu1 }
 0x914   :  { %v2027_v39 = vadd.f32 %v3148_v2, %v2286_v29 }
 0x915   :  { %v2021_v32 = vpop.f32.mrf.mxu1 }
 0x916   :  { %2096 = vmax.xlane.f32.xlu1 %v2027_v39  ;;  %2090 = vmax.xlane.f32.xlu0 %v2012_v17  ;;  %v2022_v15 = vadd.f32 %v2286_v29, %v2021_v32 }
 0x917   :  { %v3151_v46 = vpop.f32.mrf.mxu1 }
 0x918   :  { %v2037_v0 = vadd.f32 %v3151_v46, %v2286_v29 }
 0x919   :  { %v2031_v53 = vpop.f32.mrf.mxu1 }
 0x91a   :  { %v2032_v9 = vadd.f32 %v2286_v29, %v2031_v53  ;;  %2094 = vmax.xlane.f32.xlu1 %v2022_v15 }
 0x91b   :  { %v3154_v37 = vpop.f32.mrf.mxu1 }
 0x91c   :  { %2098 = vmax.xlane.f32.xlu0 %v2032_v9  ;;  %v2047_v35 = vadd.f32 %v3154_v37, %v2286_v29 }
 0x91d   :  { %v2041_v27 = vpop.f32.mrf.mxu1 }
 0x91e   :  { %v2042_v49 = vadd.f32 %v2286_v29, %v2041_v27  ;;  %2100 = vmax.xlane.f32.xlu1 %v2037_v0 }
 0x91f   :  { %v3157_v26 = vpop.f32.mrf.mxu1 }
 0x920   :  { %2102 = vmax.xlane.f32.xlu0 %v2042_v49  ;;  %v2057_v36 = vadd.f32 %v3157_v26, %v2286_v29 }
 0x921   :  { %v2051_v50 = vpop.f32.mrf.mxu1 }
 0x922   :  { %v2052_v13 = vadd.f32 %v2286_v29, %v2051_v50  ;;  %2104 = vmax.xlane.f32.xlu1 %v2047_v35 }
 0x923   :  { %v3160_v33 = vpop.f32.mrf.mxu1 }
 0x924   :  { %2106 = vmax.xlane.f32.xlu0 %v2052_v13  ;;  %v2067_v31 = vadd.f32 %v3160_v33, %v2286_v29 }
 0x925   :  { %v2061_v48 = vpop.f32.mrf.mxu1 }
 0x926   :  { %v2062_v45 = vadd.f32 %v2286_v29, %v2061_v48  ;;  %2108 = vmax.xlane.f32.xlu1 %v2057_v36 }
 0x927   :  { %v3163_v51 = vpop.f32.mrf.mxu1 }
 0x928   :  { %2110 = vmax.xlane.f32.xlu0 %v2062_v45  ;;  %v3989_v52 = vadd.f32 %v3163_v51, %v2286_v29 }
 0x929   :  { %v2071_v16 = vpop.f32.mrf.mxu1 }
 0x92a   :  { %v3987_v47 = vadd.f32 %v2286_v29, %v2071_v16  ;;  %2112 = vmax.xlane.f32.xlu1 %v2067_v31 }
 0x92b   :  { %v3166_v3 = vpop.f32.mrf.mxu1 }
 0x92c   :  { %2114 = vmax.xlane.f32.xlu0 %v3987_v47  ;;  %v3995_v40 = vadd.f32 %v3166_v3, %v2286_v29 }
 0x92d   :  { %v2081_v56 = vpop.f32.mrf.mxu1 }
 0x92e   :  { %v3992_v34 = vadd.f32 %v2286_v29, %v2081_v56  ;;  %2116 = vmax.xlane.f32.xlu1 %v3989_v52 }
 0x930   :  { %2118 = vmax.xlane.f32.xlu0 %v3992_v34 }
 0x932   :  { %2120 = vmax.xlane.f32.xlu1 %v3995_v40 }
 0x99b   :  { %v2093_v22 = vpop.xlane.xlu0 %2092 }
 0x99c   :  { %v3999_v18 = vsub.f32 %v2017_v54, %v2093_v22 }
 0x99e   :  { %v2140_v41 = vmul.f32 1.442695, %v3999_v18 }
 0x99f   :  { %v2097_v55 = vpop.xlane.xlu1 %2096  ;;  %v2091_v44 = vpop.xlane.xlu0 %2090 }
 0x9a0   :  { %3175 = vpow2.f32 %v2140_v41  ;;  %v4002_v7 = vsub.f32 %v2027_v39, %v2097_v55  ;;  %v4004_v23 = vsub.f32 %v2012_v17, %v2091_v44 }
 0x9a2   :  { %v2144_v24 = vmul.f32 1.442695, %v4002_v7  ;;  %v2138_v11 = vmul.f32 1.442695, %v4004_v23 }
 0x9a3   :  { %v2095_v8 = vpop.xlane.xlu1 %2094 }
 0x9a4   :  { %3177 = vpow2.f32 %v2144_v24  ;;  %v4008_v42 = vsub.f32 %v2022_v15, %v2095_v8 }
 0x9a5   :  { %3179 = vpow2.f32 %v2138_v11  ;;  %v2099_v19 = vpop.xlane.xlu0 %2098 }
 0x9a6   :  { %v2142_v21 = vmul.f32 1.442695, %v4008_v42  ;;  %v4011_v63 = vsub.f32 %v2032_v9, %v2099_v19 }
 0x9a7   :  { %v2101_v61 = vpop.xlane.xlu1 %2100 }
 0x9a8   :  { %3181 = vpow2.f32 %v2142_v21  ;;  %v4013_v20 = vsub.f32 %v2037_v0, %v2101_v61  ;;  %v2146_v25 = vmul.f32 1.442695, %v4011_v63 }
 0x9a9   :  { %v2103_v28 = vpop.xlane.xlu0 %2102 }
 0x9aa   :  { %v2148_v4 = vmul.f32 1.442695, %v4013_v20  ;;  %v4017_v30 = vsub.f32 %v2042_v49, %v2103_v28 }
 0x9ab   :  { %v2105_v43 = vpop.xlane.xlu1 %2104 }
 0x9ac   :  { %3183 = vpow2.f32 %v2148_v4  ;;  %v4019_v6 = vsub.f32 %v2047_v35, %v2105_v43  ;;  %v2150_v1 = vmul.f32 1.442695, %v4017_v30 }
 0x9ad   :  { %v3176_v60 = vpop.eup %3175  ;;  %3185 = vpow2.f32 %v2146_v25  ;;  %v2107_v58 = vpop.xlane.xlu0 %2106 }
 0x9ae   :  { %v2152_v5 = vmul.f32 1.442695, %v4019_v6  ;;  %v4023_v38 = vsub.f32 %v2052_v13, %v2107_v58  ;;  %2172 = vadd.xlane.f32.xlu1 %v3176_v60 }
 0x9af   :  { %v2109_v10 = vpop.xlane.xlu1 %2108 }
 0x9b0   :  { %3187 = vpow2.f32 %v2152_v5  ;;  %v4025_v14 = vsub.f32 %v2057_v36, %v2109_v10  ;;  %v2154_v62 = vmul.f32 1.442695, %v4023_v38 }
 0x9b1   :  { %v3178_v59 = vpop.eup %3177  ;;  %3189 = vpow2.f32 %v2150_v1  ;;  %v2111_v29 = vpop.xlane.xlu0 %2110 }
 0x9b2   :  { %v3180_v12 = vpop.eup %3179  ;;  %v2156_v54 = vmul.f32 1.442695, %v4025_v14  ;;  %v4029_v57 = vsub.f32 %v2062_v45, %v2111_v29  ;;  %2176 = vadd.xlane.f32.xlu1 %v3178_v59 }
 0x9b3   :  { %2170 = vadd.xlane.f32.xlu0 %v3180_v12  ;;  %v2113_v2 = vpop.xlane.xlu1 %2112 }
 0x9b4   :  { %3191 = vpow2.f32 %v2156_v54  ;;  %v4031_v17 = vsub.f32 %v2067_v31, %v2113_v2  ;;  %v2158_v32 = vmul.f32 1.442695, %v4029_v57 }
 0x9b5   :  { %v3182_v39 = vpop.eup %3181  ;;  %3193 = vpow2.f32 %v2154_v62  ;;  %v2115_v46 = vpop.xlane.xlu0 %2114 }
 0x9b6   :  { %v2160_v15 = vmul.f32 1.442695, %v4031_v17  ;;  %v4036_v53 = vsub.f32 %v3987_v47, %v2115_v46 }
 0x9b7   :  { %2174 = vadd.xlane.f32.xlu0 %v3182_v39  ;;  %v2117_v9 = vpop.xlane.xlu1 %2116 }
 0x9b8   :  { %3195 = vpow2.f32 %v2160_v15  ;;  %v4039_v37 = vsub.f32 %v3989_v52, %v2117_v9  ;;  %v2162_v27 = vmul.f32 1.442695, %v4036_v53 }
 0x9b9   :  { %v3184_v0 = vpop.eup %3183  ;;  %3197 = vpow2.f32 %v2158_v32  ;;  %v2119_v49 = vpop.xlane.xlu0 %2118 }
 0x9ba   :  { %v3186_v26 = vpop.eup %3185  ;;  %v2164_v35 = vmul.f32 1.442695, %v4039_v37  ;;  %v4044_v50 = vsub.f32 %v3992_v34, %v2119_v49  ;;  %2180 = vadd.xlane.f32.xlu1 %v3184_v0 }
 0x9bb   :  { %2178 = vadd.xlane.f32.xlu0 %v3186_v26  ;;  %v2121_v13 = vpop.xlane.xlu1 %2120 }
 0x9bc   :  { %3199 = vpow2.f32 %v2164_v35  ;;  %v4047_v33 = vsub.f32 %v3995_v40, %v2121_v13  ;;  %v2166_v48 = vmul.f32 1.442695, %v4044_v50 }
 0x9bd   :  { %v3188_v36 = vpop.eup %3187  ;;  %3201 = vpow2.f32 %v2162_v27 }
 0x9be   :  { %v3190_v45 = vpop.eup %3189  ;;  %v2168_v51 = vmul.f32 1.442695, %v4047_v33  ;;  %2184 = vadd.xlane.f32.xlu1 %v3188_v36 }
 0x9bf   :  { %2182 = vadd.xlane.f32.xlu0 %v3190_v45 }
 0x9c0   :  { %3203 = vpow2.f32 %v2168_v51 }
 0x9c1   :  { %v3192_v31 = vpop.eup %3191  ;;  %3205 = vpow2.f32 %v2166_v48 }
 0x9c2   :  { %v3194_v16 = vpop.eup %3193  ;;  %2188 = vadd.xlane.f32.xlu1 %v3192_v31 }
 0x9c3   :  { %2186 = vadd.xlane.f32.xlu0 %v3194_v16 }
 0x9c5   :  { %v3196_v47 = vpop.eup %3195 }
 0x9c6   :  { %v3198_v3 = vpop.eup %3197  ;;  %2192 = vadd.xlane.f32.xlu1 %v3196_v47 }
 0x9c7   :  { %2190 = vadd.xlane.f32.xlu0 %v3198_v3 }
 0x9c9   :  { %v3200_v52 = vpop.eup %3199 }
 0x9ca   :  { %v3202_v56 = vpop.eup %3201  ;;  %2196 = vadd.xlane.f32.xlu1 %v3200_v52 }
 0x9cb   :  { %2194 = vadd.xlane.f32.xlu0 %v3202_v56 }
 0x9cd   :  { %v3204_v34 = vpop.eup %3203 }
 0x9ce   :  { %v3206_v40 = vpop.eup %3205  ;;  %2200 = vadd.xlane.f32.xlu1 %v3204_v34 }
 0x9cf   :  { %2198 = vadd.xlane.f32.xlu0 %v3206_v40 }
 0xa37   :  { %v2173_v22 = vpop.xlane.xlu1 %2172 }
 0xa38   :  { %3207 = vlog2.f32 %v2173_v22 }
 0xa3b   :  { %v2177_v41 = vpop.xlane.xlu1 %2176 }
 0xa3c   :  { %3209 = vlog2.f32 %v2177_v41  ;;  %v2171_v55 = vpop.xlane.xlu0 %2170 }
 0xa3d   :  { %3211 = vlog2.f32 %v2171_v55 }
 0xa40   :  { %v2175_v44 = vpop.xlane.xlu0 %2174 }
 0xa41   :  { %3213 = vlog2.f32 %v2175_v44 }
 0xa43   :  { %v2181_v24 = vpop.xlane.xlu1 %2180 }
 0xa44   :  { %3215 = vlog2.f32 %v2181_v24  ;;  %v2179_v11 = vpop.xlane.xlu0 %2178 }
 0xa45   :  { %v3208_v8 = vpop.eup %3207  ;;  %3217 = vlog2.f32 %v2179_v11 }
 0xa46   :  { %v2205_v19 = vmul.f32 0.6931472, %v3208_v8 }
 0xa47   :  { %v2185_v21 = vpop.xlane.xlu1 %2184 }
 0xa48   :  { %v2235_v61 = vsub.f32 %v3999_v18, %v2205_v19  ;;  %3219 = vlog2.f32 %v2185_v21  ;;  %v2183_v25 = vpop.xlane.xlu0 %2182 }
 0xa49   :  { %v3210_v28 = vpop.eup %3209  ;;  %3221 = vlog2.f32 %v2183_v25 }
 0xa4a   :  { %v3212_v4 = vpop.eup %3211  ;;  %2251 = vst [vmem:[#allocation11 + $0x8] sm:$0xff] %v2235_v61  ;;  %v2209_v43 = vmul.f32 0.6931472, %v3210_v28 }
 0xa4b   :  { %v2203_v60 = vmul.f32 0.6931472, %v3212_v4  ;;  %v2189_v1 = vpop.xlane.xlu1 %2188 }
 0xa4c   :  { %v2237_v58 = vsub.f32 %v4002_v7, %v2209_v43  ;;  %3223 = vlog2.f32 %v2189_v1  ;;  %v2187_v5 = vpop.xlane.xlu0 %2186 }
 0xa4d   :  { %v2234_v10 = vsub.f32 %v4004_v23, %v2203_v60  ;;  %3225 = vlog2.f32 %v2187_v5 }
 0xa4e   :  { %v3214_v59 = vpop.eup %3213  ;;  %2253 = vst [vmem:[#allocation11 + $0x18] sm:$0xff] %v2237_v58 }
 0xa4f   :  { %2250 = vst [vmem:[#allocation11] sm:$0xff] %v2234_v10  ;;  %v2207_v18 = vmul.f32 0.6931472, %v3214_v59  ;;  %v2193_v62 = vpop.xlane.xlu1 %2192 }
 0xa50   :  { %3227 = vlog2.f32 %v2193_v62  ;;  %v2191_v29 = vpop.xlane.xlu0 %2190 }
 0xa51   :  { %v3216_v12 = vpop.eup %3215  ;;  %v2236_v54 = vsub.f32 %v4008_v42, %v2207_v18  ;;  %3229 = vlog2.f32 %v2191_v29 }
 0xa52   :  { %v3218_v2 = vpop.eup %3217  ;;  %v2213_v39 = vmul.f32 0.6931472, %v3216_v12 }
 0xa53   :  { %2252 = vst [vmem:[#allocation11 + $0x10] sm:$0xff] %v2236_v54  ;;  %v2211_v7 = vmul.f32 0.6931472, %v3218_v2  ;;  %v2197_v32 = vpop.xlane.xlu1 %2196 }
 0xa54   :  { %v2239_v46 = vsub.f32 %v4013_v20, %v2213_v39  ;;  %3231 = vlog2.f32 %v2197_v32  ;;  %v2195_v23 = vpop.xlane.xlu0 %2194 }
 0xa55   :  { %v3220_v15 = vpop.eup %3219  ;;  %v2238_v9 = vsub.f32 %v4011_v63, %v2211_v7  ;;  %3233 = vlog2.f32 %v2195_v23 }
 0xa56   :  { %v3222_v0 = vpop.eup %3221  ;;  %2255 = vst [vmem:[#allocation11 + $0x28] sm:$0xff] %v2239_v46  ;;  %v2217_v27 = vmul.f32 0.6931472, %v3220_v15 }
 0xa57   :  { %2254 = vst [vmem:[#allocation11 + $0x20] sm:$0xff] %v2238_v9  ;;  %v2215_v49 = vmul.f32 0.6931472, %v3222_v0  ;;  %v2201_v42 = vpop.xlane.xlu1 %2200 }
 0xa58   :  { %v2241_v26 = vsub.f32 %v4019_v6, %v2217_v27  ;;  %3235 = vlog2.f32 %v2201_v42  ;;  %v2199_v35 = vpop.xlane.xlu0 %2198 }
 0xa59   :  { %v3224_v13 = vpop.eup %3223  ;;  %v2240_v36 = vsub.f32 %v4017_v30, %v2215_v49  ;;  %3237 = vlog2.f32 %v2199_v35 }
 0xa5a   :  { %v3226_v20 = vpop.eup %3225  ;;  %2257 = vst [vmem:[#allocation11 + $0x38] sm:$0xff] %v2241_v26  ;;  %v2221_v48 = vmul.f32 0.6931472, %v3224_v13 }
 0xa5b   :  { %2256 = vst [vmem:[#allocation11 + $0x30] sm:$0xff] %v2240_v36  ;;  %v2219_v63 = vmul.f32 0.6931472, %v3226_v20 }
 0xa5c   :  { %v2243_v45 = vsub.f32 %v4025_v14, %v2221_v48 }
 0xa5d   :  { %v3228_v51 = vpop.eup %3227  ;;  %v2242_v31 = vsub.f32 %v4023_v38, %v2219_v63 }
 0xa5e   :  { %v3230_v16 = vpop.eup %3229  ;;  %2259 = vst [vmem:[#allocation11 + $0x48] sm:$0xff] %v2243_v45  ;;  %v2225_v47 = vmul.f32 0.6931472, %v3228_v51 }
 0xa5f   :  { %2258 = vst [vmem:[#allocation11 + $0x40] sm:$0xff] %v2242_v31  ;;  %v2223_v6 = vmul.f32 0.6931472, %v3230_v16 }
 0xa60   :  { %v2245_v3 = vsub.f32 %v4031_v17, %v2225_v47 }
 0xa61   :  { %v3232_v52 = vpop.eup %3231  ;;  %v2244_v30 = vsub.f32 %v4029_v57, %v2223_v6 }
 0xa62   :  { %v3234_v56 = vpop.eup %3233  ;;  %2261 = vst [vmem:[#allocation11 + $0x58] sm:$0xff] %v2245_v3  ;;  %v2229_v34 = vmul.f32 0.6931472, %v3232_v52 }
 0xa63   :  { %2260 = vst [vmem:[#allocation11 + $0x50] sm:$0xff] %v2244_v30  ;;  %v2227_v40 = vmul.f32 0.6931472, %v3234_v56 }
 0xa64   :  { %v2247_v14 = vsub.f32 %v4039_v37, %v2229_v34 }
 0xa65   :  { %v3236_v22 = vpop.eup %3235  ;;  %v2246_v38 = vsub.f32 %v4036_v53, %v2227_v40 }
 0xa66   :  { %v3238_v41 = vpop.eup %3237  ;;  %2263 = vst [vmem:[#allocation11 + $0x68] sm:$0xff] %v2247_v14  ;;  %v2233_v55 = vmul.f32 0.6931472, %v3236_v22 }
 0xa67   :  { %2262 = vst [vmem:[#allocation11 + $0x60] sm:$0xff] %v2246_v38  ;;  %v2231_v17 = vmul.f32 0.6931472, %v3238_v41 }
 0xa68   :  { %v2249_v44 = vsub.f32 %v4047_v33, %v2233_v55 }
 0xa69   :  { %v2248_v57 = vsub.f32 %v4044_v50, %v2231_v17 }
 0xa6a   :  { %2265 = vst [vmem:[#allocation11 + $0x78] sm:$0xff] %v2249_v44 }
 0xa6b   :  { %2264 = vst [vmem:[#allocation11 + $0x70] sm:$0xff] %v2248_v57 }
 0xa6c   :  { %3366 = shalt.err (!%p3363_p1)
}
 0xa6d   :  { %2277 = dma.vmem_to_hbm [thread:$0]  %s2272_s26, 2048, %s4080_s7, [#allocation4], %s3385_s29, %s3385_s29, %s3386_s30  }
 0xa6e   :  { %3381 = dma.done.wait [#allocation4], 2048  }
 0xa6f   :  { %3382 = vsyncadd [#allocation4], 4294965248 }
 0xa70   :  { %2281 = vsyncpa [#allocation3], 1 }
 0xa71   :  { %2282 = vsyncpa [#allocation6], 1 }
 0xa72   :  { %2283 = vsyncpa [#allocation9], 1 }
 0xa73   :  { %2284 = vsyncpa [#allocation4], 1 }

</bundles_post_ra>
